<compile_context>
chip_gen: v7x
topology: tpu7x:2x2x1
jax: 0.10.0
libtpu: 0.0.40
codegen_flags: <defaults>
</compile_context>

<pallas_src>
import jax
import jax.numpy as jnp
from jax.experimental import pallas as pl
from jax.experimental.pallas import tpu as pltpu

# --- true (unpadded) dims from the PyTorch module ---
D_IN, D_H1, D_H2, D_OUT = 439, 900, 100, 3

# --- padded output-feature dims (multiples of 128) ---
P_H1, P_H2, P_OUT = 1024, 128, 128


def _mlp_kernel(x_ref, w1_ref, b1_ref, w2_ref, b2_ref, w3_ref, b3_ref, o_ref):
    """Fused 3-layer MLP forward on one batch tile.

    x_ref : (TB, 439)  f32 or bf16 activations (cast to bf16 for the MXU)
    w1    : (439, 1024) bf16   b1: (1, 1024) f32
    w2    : (1024, 128) bf16   b2: (1, 128)  f32
    w3    : (128, 128)  bf16   b3: (1, 128)  f32
    o_ref : (TB, 128)   bf16 (halved writeback; accumulation is f32)
    """
    x = x_ref[...].astype(jnp.bfloat16)

    h1 = jnp.dot(x, w1_ref[...], preferred_element_type=jnp.float32) + b1_ref[...]
    h1 = jnp.maximum(h1, 0.0).astype(jnp.bfloat16)

    h2 = jnp.dot(h1, w2_ref[...], preferred_element_type=jnp.float32) + b2_ref[...]
    h2 = jnp.maximum(h2, 0.0).astype(jnp.bfloat16)

    o = jnp.dot(h2, w3_ref[...], preferred_element_type=jnp.float32) + b3_ref[...]
    o_ref[...] = o.astype(o_ref.dtype)


def _choose_tile_b(batch, max_tile=512):
    """Big tiles amortize the ~0.35 us/step pipeline overhead; prefer an even
    grid so v7x's two TensorCores stay balanced.  Multiples of 16 keep the
    bf16 output tile sublane-aligned."""
    if batch <= 2 * max_tile:
        # Small/moderate batch: at most 2 grid steps.
        half = pl.cdiv(batch, 2)
        return max(16, min(max_tile, pl.cdiv(half, 16) * 16))
    tile = max_tile
    steps = pl.cdiv(batch, tile)
    if steps % 2 == 1:
        # Nudge the tile down for an even step count if it costs < 2x tile size.
        even_tile = pl.cdiv(pl.cdiv(batch, steps + 1), 16) * 16
        if even_tile >= max_tile // 2:
            tile = even_tile
    return tile


def pack_params(params):
    """One-time prepack: pad output-feature dims to 128 multiples, cast weights
    to bf16, keep biases in f32.  Call once at init, NOT per forward call."""
    w1, b1, w2, b2, w3, b3 = params
    w1_p = jnp.zeros((D_IN, P_H1), jnp.bfloat16).at[:, :D_H1].set(
        w1.astype(jnp.bfloat16))
    b1_p = jnp.zeros((1, P_H1), jnp.float32).at[0, :D_H1].set(b1)
    w2_p = jnp.zeros((P_H1, P_H2), jnp.bfloat16).at[:D_H1, :D_H2].set(
        w2.astype(jnp.bfloat16))
    b2_p = jnp.zeros((1, P_H2), jnp.float32).at[0, :D_H2].set(b2)
    w3_p = jnp.zeros((P_H2, P_OUT), jnp.bfloat16).at[:D_H2, :D_OUT].set(
        w3.astype(jnp.bfloat16))
    b3_p = jnp.zeros((1, P_OUT), jnp.float32).at[0, :D_OUT].set(b3)
    return (w1_p, b1_p, w2_p, b2_p, w3_p, b3_p)


def classifier_forward(x, packed_params, *, tile_b=None):
    """x: (B, 439) float32 (or bfloat16 for the reduced-HBM fast path).
    packed_params: output of pack_params().  Returns (B, 3) float32 logits."""
    w1_p, b1_p, w2_p, b2_p, w3_p, b3_p = packed_params
    B = x.shape[0]
    if tile_b is None:
        tile_b = _choose_tile_b(B)
    grid = (pl.cdiv(B, tile_b),)

    out_p = pl.pallas_call(
        _mlp_kernel,
        out_shape=jax.ShapeDtypeStruct((B, P_OUT), jnp.bfloat16),
        grid_spec=pltpu.PrefetchScalarGridSpec(
            num_scalar_prefetch=0,
            grid=grid,
            in_specs=[
                # activations: stream batch tiles; last dim 439 == full array dim
                pl.BlockSpec((tile_b, D_IN), lambda i: (i, 0)),
                # weights/biases: constant index_map -> resident, DMA'd once
                pl.BlockSpec((D_IN, P_H1), lambda i: (0, 0)),
                pl.BlockSpec((1, P_H1), lambda i: (0, 0)),
                pl.BlockSpec((P_H1, P_H2), lambda i: (0, 0)),
                pl.BlockSpec((1, P_H2), lambda i: (0, 0)),
                pl.BlockSpec((P_H2, P_OUT), lambda i: (0, 0)),
                pl.BlockSpec((1, P_OUT), lambda i: (0, 0)),
            ],
            out_specs=pl.BlockSpec((tile_b, P_OUT), lambda i: (i, 0)),
        ),
        compiler_params=pltpu.CompilerParams(
            dimension_semantics=("parallel",),   # shard batch axis across TCs (v7x)
            vmem_limit_bytes=32 * 1024 * 1024,   # headroom for tile_b=512+ on v5e
        ),
    )(x, w1_p, b1_p, w2_p, b2_p, w3_p, b3_p)

    # Tiny slice/cast pass: reads the bf16 slab (256 B/row), writes 12 B/row.
    return out_p[:, :D_OUT].astype(jnp.float32)


def predict(logits):
    """Mirror Classifier.predict(): softmax + the module's explicit comparisons
    (strict '>' -> ties route to class 1, exactly as the PyTorch loop does)."""
    probs = jax.nn.softmax(logits, axis=1)
    p0, p1, p2 = probs[:, 0], probs[:, 1], probs[:, 2]
    is0 = (p0 > p1) & (p0 > p2)
    is2 = (p2 > p0) & (p2 > p1)
    return jnp.where(is0, 0, jnp.where(is2, 2, 1))


def init_params(key):
    """Deterministic init mirroring torch.nn.Linear default (U[-1/sqrt(fan_in), +])."""
    def linear(key, fan_in, fan_out):
        kw, kb = jax.random.split(key)
        bound = 1.0 / jnp.sqrt(fan_in)
        w = jax.random.uniform(kw, (fan_in, fan_out), jnp.float32, -bound, bound)
        b = jax.random.uniform(kb, (fan_out,), jnp.float32, -bound, bound)
        return w, b

    k1, k2, k3 = jax.random.split(key, 3)
    w1, b1 = linear(k1, D_IN, D_H1)
    w2, b2 = linear(k2, D_H1, D_H2)
    w3, b3 = linear(k3, D_H2, D_OUT)
    return (w1, b1, w2, b2, w3, b3)


def reference_forward_f32(x, params):
    w1, b1, w2, b2, w3, b3 = params
    h1 = jnp.maximum(x @ w1 + b1, 0.0)
    h2 = jnp.maximum(h1 @ w2 + b2, 0.0)
    return h2 @ w3 + b3


def reference_forward_bf16(x, params):
    """Same bf16-in / f32-accumulate / bf16-writeback recipe as the kernel."""
    w1, b1, w2, b2, w3, b3 = params
    bf = jnp.bfloat16
    h1 = jnp.maximum(
        jnp.dot(x.astype(bf), w1.astype(bf), preferred_element_type=jnp.float32) + b1, 0.0)
    h2 = jnp.maximum(
        jnp.dot(h1.astype(bf), w2.astype(bf), preferred_element_type=jnp.float32) + b2, 0.0)
    out = jnp.dot(h2.astype(bf), w3.astype(bf), preferred_element_type=jnp.float32) + b3
    return out.astype(bf).astype(jnp.float32)


if __name__ == "__main__":
    key = jax.random.PRNGKey(0)
    kp, kx = jax.random.split(key)

    params = init_params(kp)
    packed = pack_params(params)  # prepack once (padded + bf16 weights)

    batch = 16  # small demo batch -> tile_b=16, single grid step
    x = jax.random.normal(kx, (batch, D_IN), jnp.float32)

    fwd = jax.jit(classifier_forward)
    logits = jax.block_until_ready(fwd(x, packed))
    assert logits.shape == (batch, D_OUT)
    assert logits.dtype == jnp.float32

    # Tight check vs a reference using the same bf16/f32 recipe (tolerance
    # allows ~1 bf16 ULP of writeback rounding difference).
    ref_bf16 = reference_forward_bf16(x, params)
    assert jnp.allclose(logits, ref_bf16, atol=1e-2, rtol=1e-2), "mismatch vs bf16 reference"

    # Loose sanity check vs the pure-f32 PyTorch-equivalent math.
    ref_f32 = reference_forward_f32(x, params)
    assert jnp.allclose(logits, ref_f32, atol=1e-1, rtol=1e-1), "mismatch vs f32 reference"

    # bf16-input fast path (halves the dominant HBM stream on v6e/v7x).
    logits_bf16_in = jax.block_until_ready(fwd(x.astype(jnp.bfloat16), packed))
    assert jnp.allclose(logits_bf16_in, logits, atol=1e-2, rtol=1e-2), "bf16-input path mismatch"

    # predict() semantics (softmax + the module's explicit tie-to-1 comparisons)
    classes = jax.block_until_ready(predict(logits))
    assert classes.shape == (batch,)

    print("KERNEL_OK")
</pallas_src>

<mosaic_0001>
module attributes {stable_mosaic.version = 11 : i64} {
  func.func @_mlp_kernel(%arg0: i32, %arg1: memref<16x439xf32, #tpu.memory_space<vmem>>, %arg2: memref<439x1024xbf16, #tpu.memory_space<vmem>>, %arg3: memref<1x1024xf32, #tpu.memory_space<vmem>>, %arg4: memref<1024x128xbf16, #tpu.memory_space<vmem>>, %arg5: memref<1x128xf32, #tpu.memory_space<vmem>>, %arg6: memref<128x128xbf16, #tpu.memory_space<vmem>>, %arg7: memref<1x128xf32, #tpu.memory_space<vmem>>, %arg8: memref<16x128xbf16, #tpu.memory_space<vmem>>) attributes {dimension_semantics = [#tpu.dimension_semantics<parallel>], iteration_bounds = array<i64: 1>, scalar_prefetch = 0 : i64, scratch_operands = 0 : i64, tpu.core_type = #tpu.core_type<tc>, window_params = [{transform_indices = @transform_0, window_bounds = array<i64: 16, 439>}, {pipeline_mode = #tpu.pipeline_mode<synchronous>, transform_indices = @transform_1, window_bounds = array<i64: 439, 1024>}, {pipeline_mode = #tpu.pipeline_mode<synchronous>, transform_indices = @transform_2, window_bounds = array<i64: 1, 1024>}, {pipeline_mode = #tpu.pipeline_mode<synchronous>, transform_indices = @transform_3, window_bounds = array<i64: 1024, 128>}, {pipeline_mode = #tpu.pipeline_mode<synchronous>, transform_indices = @transform_4, window_bounds = array<i64: 1, 128>}, {pipeline_mode = #tpu.pipeline_mode<synchronous>, transform_indices = @transform_5, window_bounds = array<i64: 128, 128>}, {pipeline_mode = #tpu.pipeline_mode<synchronous>, transform_indices = @transform_6, window_bounds = array<i64: 1, 128>}, {transform_indices = @transform_7, window_bounds = array<i64: 16, 128>}]} {
    %c0 = arith.constant 0 : index
    %c0_0 = arith.constant 0 : index
    %0 = vector.load %arg1[%c0, %c0_0] : memref<16x439xf32, #tpu.memory_space<vmem>>, vector<16x439xf32>
    %1 = arith.truncf %0 : vector<16x439xf32> to vector<16x439xbf16>
    %c0_1 = arith.constant 0 : index
    %c0_2 = arith.constant 0 : index
    %2 = vector.load %arg2[%c0_1, %c0_2] : memref<439x1024xbf16, #tpu.memory_space<vmem>>, vector<439x1024xbf16>
    %cst = arith.constant dense<0.000000e+00> : vector<16x1024xf32>
    %3 = tpu.matmul %1, %2, %cst {dimension_numbers = #tpu.dot_dimension_numbers<[1], [0], [0], [1], [0, 0, 1, 1], [], []>} : vector<16x439xbf16>, vector<439x1024xbf16>, vector<16x1024xf32> -> vector<16x1024xf32>
    %c0_3 = arith.constant 0 : index
    %c0_4 = arith.constant 0 : index
    %4 = vector.load %arg3[%c0_3, %c0_4] : memref<1x1024xf32, #tpu.memory_space<vmem>>, vector<1x1024xf32>
    %5 = vector.broadcast %4 : vector<1x1024xf32> to vector<16x1024xf32>
    %6 = arith.addf %3, %5 : vector<16x1024xf32>
    %cst_5 = arith.constant 0.000000e+00 : f32
    %7 = vector.broadcast %cst_5 : f32 to vector<16x1024xf32>
    %8 = arith.maximumf %6, %7 : vector<16x1024xf32>
    %9 = arith.truncf %8 : vector<16x1024xf32> to vector<16x1024xbf16>
    %c0_6 = arith.constant 0 : index
    %c0_7 = arith.constant 0 : index
    %10 = vector.load %arg4[%c0_6, %c0_7] : memref<1024x128xbf16, #tpu.memory_space<vmem>>, vector<1024x128xbf16>
    %cst_8 = arith.constant dense<0.000000e+00> : vector<16x128xf32>
    %11 = tpu.matmul %9, %10, %cst_8 {dimension_numbers = #tpu.dot_dimension_numbers<[1], [0], [0], [1], [0, 0, 1, 1], [], []>} : vector<16x1024xbf16>, vector<1024x128xbf16>, vector<16x128xf32> -> vector<16x128xf32>
    %c0_9 = arith.constant 0 : index
    %c0_10 = arith.constant 0 : index
    %12 = vector.load %arg5[%c0_9, %c0_10] : memref<1x128xf32, #tpu.memory_space<vmem>>, vector<1x128xf32>
    %13 = vector.broadcast %12 : vector<1x128xf32> to vector<16x128xf32>
    %14 = arith.addf %11, %13 : vector<16x128xf32>
    %cst_11 = arith.constant 0.000000e+00 : f32
    %15 = vector.broadcast %cst_11 : f32 to vector<16x128xf32>
    %16 = arith.maximumf %14, %15 : vector<16x128xf32>
    %17 = arith.truncf %16 : vector<16x128xf32> to vector<16x128xbf16>
    %c0_12 = arith.constant 0 : index
    %c0_13 = arith.constant 0 : index
    %18 = vector.load %arg6[%c0_12, %c0_13] : memref<128x128xbf16, #tpu.memory_space<vmem>>, vector<128x128xbf16>
    %cst_14 = arith.constant dense<0.000000e+00> : vector<16x128xf32>
    %19 = tpu.matmul %17, %18, %cst_14 {dimension_numbers = #tpu.dot_dimension_numbers<[1], [0], [0], [1], [0, 0, 1, 1], [], []>} : vector<16x128xbf16>, vector<128x128xbf16>, vector<16x128xf32> -> vector<16x128xf32>
    %c0_15 = arith.constant 0 : index
    %c0_16 = arith.constant 0 : index
    %20 = vector.load %arg7[%c0_15, %c0_16] : memref<1x128xf32, #tpu.memory_space<vmem>>, vector<1x128xf32>
    %21 = vector.broadcast %20 : vector<1x128xf32> to vector<16x128xf32>
    %22 = arith.addf %19, %21 : vector<16x128xf32>
    %23 = arith.truncf %22 : vector<16x128xf32> to vector<16x128xbf16>
    %c0_17 = arith.constant 0 : index
    %c0_18 = arith.constant 0 : index
    %24 = vector.load %arg8[%c0_17, %c0_18] : memref<16x128xbf16, #tpu.memory_space<vmem>>, vector<16x128xbf16>
    tpu.vector_store %arg8[%c0_17, %c0_18], %23 {strides = array<i32>} : memref<16x128xbf16, #tpu.memory_space<vmem>>, vector<16x128xbf16>,
    return
  }
  func.func @transform_0(%arg0: i32) -> (i32, i32) {
    %c0_i32 = arith.constant 0 : i32
    %c0_i32_0 = arith.constant 0 : i32
    return %arg0, %c0_i32 : i32, i32
  }
  func.func @transform_1(%arg0: i32) -> (i32, i32) {
    %c0_i32 = arith.constant 0 : i32
    %c0_i32_0 = arith.constant 0 : i32
    %c0_i32_1 = arith.constant 0 : i32
    return %c0_i32, %c0_i32_0 : i32, i32
  }
  func.func @transform_2(%arg0: i32) -> (i32, i32) {
    %c0_i32 = arith.constant 0 : i32
    %c0_i32_0 = arith.constant 0 : i32
    %c0_i32_1 = arith.constant 0 : i32
    return %c0_i32, %c0_i32_0 : i32, i32
  }
  func.func @transform_3(%arg0: i32) -> (i32, i32) {
    %c0_i32 = arith.constant 0 : i32
    %c0_i32_0 = arith.constant 0 : i32
    %c0_i32_1 = arith.constant 0 : i32
    return %c0_i32, %c0_i32_0 : i32, i32
  }
  func.func @transform_4(%arg0: i32) -> (i32, i32) {
    %c0_i32 = arith.constant 0 : i32
    %c0_i32_0 = arith.constant 0 : i32
    %c0_i32_1 = arith.constant 0 : i32
    return %c0_i32, %c0_i32_0 : i32, i32
  }
  func.func @transform_5(%arg0: i32) -> (i32, i32) {
    %c0_i32 = arith.constant 0 : i32
    %c0_i32_0 = arith.constant 0 : i32
    %c0_i32_1 = arith.constant 0 : i32
    return %c0_i32, %c0_i32_0 : i32, i32
  }
  func.func @transform_6(%arg0: i32) -> (i32, i32) {
    %c0_i32 = arith.constant 0 : i32
    %c0_i32_0 = arith.constant 0 : i32
    %c0_i32_1 = arith.constant 0 : i32
    return %c0_i32, %c0_i32_0 : i32, i32
  }
  func.func @transform_7(%arg0: i32) -> (i32, i32) {
    %c0_i32 = arith.constant 0 : i32
    %c0_i32_0 = arith.constant 0 : i32
    return %arg0, %c0_i32 : i32, i32
  }
}

</mosaic_0001>

<bundles_post_ra>
// kernel: classifier_forward.1
= control target key start
LH: loop header
LB: loop body
LE: loop exit
PB: predicated region body
PF: predicated region fallthrough
CT: control target
= control target key end

     0   :  { %12 = vsyncpa [#allocation3], 0  ;;  %s3559_s0 = inlined_call_operand.hbm [shape: f32[16,439], index: 0, kind: input, shape index: {}]   ;;  %s3560_s1 = inlined_call_operand.hbm [shape: bf16[439,1024], index: 1, kind: input, shape index: {}]   ;;  %s3561_s2 = inlined_call_operand.hbm [shape: f32[1,1024], index: 2, kind: input, shape index: {}]   ;;  %s3562_s3 = inlined_call_operand.hbm [shape: bf16[1024,128], index: 3, kind: input, shape index: {}]   ;;  %s3563_s4 = inlined_call_operand.vmem [shape: f32[1,128], index: 4, kind: input, shape index: {}]   ;;  %s3564_s5 = inlined_call_operand.hbm [shape: bf16[128,128], index: 5, kind: input, shape index: {}]   ;;  %s3565_s6 = inlined_call_operand.vmem [shape: f32[1,128], index: 6, kind: input, shape index: {}]   ;;  %s3566_s7 = inlined_call_operand.vmem [shape: bf16[16,128], index: 7, kind: output, shape index: {}]  }
   0x1   :  { %13 = vsyncpa [#allocation5], 0 }
   0x2   :  { %14 = vsyncpa [#allocation8], 0  ;;  %s3350_s24 = smov [#allocation4]   ;;  %s3351_s26 = smov [#allocation7]  }
   0x3   :  { %s32_s25 = sshll.u32 %s3350_s24, 4  ;;  %s54_s27 = sshll.u32 %s3351_s26, 4  ;;  %s33_s25 = int_to_ptr.vmem [resolvable:$true] %s32_s25  ;;  %s3402_s27 = int_to_ptr.vmem [resolvable:$true] %s54_s27 }
   0x4   :  { %s3234_s30 = scalar_lea.hbm %s3560_s1, 28160 }
   0x5   :  { %p3235_p0 = scmp.ne.s32.totalorder %s3560_s1, %s3234_s30  ;;  %p3238_p1 = scmp.lt.u32.totalorder %s3234_s30, %s3560_s1 }
   0x7   :  { %p3240_p2 = pnand %p3238_p1, %p3235_p0 }
   0x9   :  { %3243 = shalt.err (!%p3240_p2)
}
   0xa   :  { %s3244_s12 = scalar_lea.vmem %s33_s25, 28160  ;;  %p3249_p4 = scmp.lt.s32.totalorder %s33_s25, %s33_s25 }
   0xb   :  { %p3245_p3 = scmp.ne.s32.totalorder %s33_s25, %s3244_s12  ;;  %p3250_p5 = scmp.lt.s32.totalorder %s3244_s12, %s3244_s12 }
   0xd   :  { %p3251_p6 = por %p3250_p5, %p3249_p4 }
   0xf   :  { %p3252_p7 = pnand %p3251_p6, %p3245_p3 }
  0x11   :  { %3255 = shalt.err (!%p3252_p7)
}
  0x12   :  { %s3352_s13 = smov 512   ;;  %s3353_s14 = smov 32  }
  0x13   :  { %38 = dma.hbm_to_vmem [thread:$0]  %s3560_s1, 28160, %s33_s25, [#allocation5], %s3352_s13, %s3352_s13, %s3353_s14  }
  0x14   :  { %s3256_s19 = scalar_lea.hbm %s3562_s3, 8192 }
  0x15   :  { %p3257_p8 = scmp.ne.s32.totalorder %s3562_s3, %s3256_s19  ;;  %p3260_p9 = scmp.lt.u32.totalorder %s3256_s19, %s3562_s3 }
  0x17   :  { %p3262_p10 = pnand %p3260_p9, %p3257_p8 }
  0x19   :  { %3265 = shalt.err (!%p3262_p10)
}
  0x1a   :  { %s3266_s24 = scalar_lea.vmem %s3402_s27, 8192  ;;  %p3271_p12 = scmp.lt.s32.totalorder %s3402_s27, %s3402_s27 }
  0x1b   :  { %p3267_p11 = scmp.ne.s32.totalorder %s3402_s27, %s3266_s24  ;;  %p3272_p13 = scmp.lt.s32.totalorder %s3266_s24, %s3266_s24 }
  0x1d   :  { %p3273_p0 = por %p3272_p13, %p3271_p12 }
  0x1f   :  { %p3274_p1 = pnand %p3273_p0, %p3267_p11 }
  0x21   :  { %3277 = shalt.err (!%p3274_p1)
}
  0x22   :  { %s3354_s1 = smov 64   ;;  %s3355_s25 = smov 4  }
  0x23   :  { %60 = dma.hbm_to_vmem [thread:$0]  %s3562_s3, 8192, %s3402_s27, [#allocation8], %s3354_s1, %s3354_s1, %s3355_s25  }
  0x24   :  { %s3356_s29 = smov [#allocation2]   ;;  %s3357_s8 = smov [#allocation6]  }
  0x25   :  { %s20_s30 = sshll.u32 %s3356_s29, 4  ;;  %s45_s9 = sshll.u32 %s3357_s8, 4  ;;  %s21_s30 = int_to_ptr.vmem [resolvable:$true] %s20_s30  ;;  %s46_s9 = int_to_ptr.vmem [resolvable:$true] %s45_s9 }
  0x26   :  { %s3278_s12 = scalar_lea.hbm %s3559_s0, 1024 }
  0x27   :  { %p3279_p2 = scmp.ne.s32.totalorder %s3559_s0, %s3278_s12  ;;  %p3282_p3 = scmp.lt.u32.totalorder %s3278_s12, %s3559_s0 }
  0x29   :  { %p3284_p4 = pnand %p3282_p3, %p3279_p2 }
  0x2b   :  { %3287 = shalt.err (!%p3284_p4)
}
  0x2c   :  { %s3288_s3 = scalar_lea.vmem %s21_s30, 1024  ;;  %p3293_p6 = scmp.lt.s32.totalorder %s21_s30, %s21_s30 }
  0x2d   :  { %p3289_p5 = scmp.ne.s32.totalorder %s21_s30, %s3288_s3  ;;  %p3294_p7 = scmp.lt.s32.totalorder %s3288_s3, %s3288_s3 }
  0x2f   :  { %p3295_p8 = por %p3294_p7, %p3293_p6 }
  0x31   :  { %p3296_p9 = pnand %p3295_p8, %p3289_p5 }
  0x33   :  { %3299 = shalt.err (!%p3296_p9)
}
  0x34   :  { %26 = dma.hbm_to_vmem [thread:$0]  %s3559_s0, 1024, %s21_s30, [#allocation3], %s3352_s13, %s3352_s13, %s3353_s14  }
  0x35   :  { %s3300_s22 = scalar_lea.hbm %s3561_s2, 128 }
  0x36   :  { %p3301_p10 = scmp.ne.s32.totalorder %s3561_s2, %s3300_s22  ;;  %p3304_p11 = scmp.lt.u32.totalorder %s3300_s22, %s3561_s2 }
  0x38   :  { %p3306_p12 = pnand %p3304_p11, %p3301_p10 }
  0x3a   :  { %3309 = shalt.err (!%p3306_p12)
}
  0x3b   :  { %s3310_s29 = scalar_lea.vmem %s46_s9, 128  ;;  %p3315_p0 = scmp.lt.s32.totalorder %s46_s9, %s46_s9 }
  0x3c   :  { %p3311_p13 = scmp.ne.s32.totalorder %s46_s9, %s3310_s29  ;;  %p3316_p1 = scmp.lt.s32.totalorder %s3310_s29, %s3310_s29 }
  0x3e   :  { %p3317_p2 = por %p3316_p1, %p3315_p0 }
  0x40   :  { %p3318_p3 = pnand %p3317_p2, %p3311_p13 }
  0x42   :  { %3321 = shalt.err (!%p3318_p3)
}
  0x43   :  { %48 = dma.hbm_to_vmem [thread:$0]  %s3561_s2, 128, %s46_s9, [#allocation5]  }
  0x44   :  { %s3358_s14 = smov [#allocation9]   ;;  %s3322_s11 = scalar_lea.hbm %s3564_s5, 1024 }
  0x45   :  { %s68_s30 = sshll.u32 %s3358_s14, 4  ;;  %p3323_p4 = scmp.ne.s32.totalorder %s3564_s5, %s3322_s11  ;;  %s69_s30 = int_to_ptr.vmem [resolvable:$true] %s68_s30 }
  0x46   :  { %p3326_p5 = scmp.lt.u32.totalorder %s3322_s11, %s3564_s5 }
  0x48   :  { %p3328_p6 = pnand %p3326_p5, %p3323_p4 }
  0x4a   :  { %3331 = shalt.err (!%p3328_p6)
}
  0x4b   :  { %s3332_s18 = scalar_lea.vmem %s69_s30, 1024  ;;  %p3337_p8 = scmp.lt.s32.totalorder %s69_s30, %s69_s30 }
  0x4c   :  { %p3333_p7 = scmp.ne.s32.totalorder %s69_s30, %s3332_s18  ;;  %p3338_p9 = scmp.lt.s32.totalorder %s3332_s18, %s3332_s18 }
  0x4e   :  { %p3339_p10 = por %p3338_p9, %p3337_p8 }
  0x50   :  { %p3340_p11 = pnand %p3339_p10, %p3333_p7 }
  0x52   :  { %3343 = shalt.err (!%p3340_p11)
}
  0x53   :  { %74 = dma.hbm_to_vmem [thread:$0]  %s3564_s5, 1024, %s69_s30, [#allocation8], %s3354_s1, %s3354_s1, %s3355_s25  }
  0x54   :  { %3344 = dma.done.wait [#allocation3], 1024  }
  0x55   :  { %3345 = vsyncadd [#allocation3], 4294966272 }
  0x56   :  { %3346 = dma.done.wait [#allocation5], 28288  }
  0x57   :  { %3347 = vsyncadd [#allocation5], 4294939008 }
  0x58   :  { %3348 = dma.done.wait [#allocation8], 9216  }
  0x59   :  { %3349 = vsyncadd [#allocation8], 4294958080  ;;  %v105_v0 = vld [vmem:[#allocation4] sm:$0xff]  ;;  %v106_v2 = vld [vmem:[#allocation4 + $0x8] sm:$0xff]  ;;  %vm1467_vm0 = vcmask 449536   ;;  %vm1471_vm1 = vcmask 1042432  }
  0x5a   :  { %v109_v1 = vld [vmem:[#allocation4 + $0x20] sm:$0xff]  ;;  %v110_v4 = vld [vmem:[#allocation4 + $0x28] sm:$0xff]  ;;  %vm1472_vm2 = vcmask 1043456   ;;  %vm3361_vm3 = vmmov 0  }
  0x5b   :  { %v2683_v3 = vcombine.high %v105_v0, %v109_v1  ;;  %v2682_v5 = vcombine.low %v105_v0, %v109_v1  ;;  %v113_v6 = vld [vmem:[#allocation4 + $0x40] sm:$0xff]  ;;  %v2685_v8 = vcombine.high %v106_v2, %v110_v4  ;;  %v2684_v9 = vcombine.low %v106_v2, %v110_v4  ;;  %v114_v11 = vld [vmem:[#allocation4 + $0x48] sm:$0xff] }
  0x5c   :  { %v117_v7 = vld [vmem:[#allocation4 + $0x60] sm:$0xff]  ;;  %v118_v12 = vld [vmem:[#allocation4 + $0x68] sm:$0xff] }
  0x5d   :  { %v2691_v10 = vcombine.high %v113_v6, %v117_v7  ;;  %v121_v13 = vld [vmem:[#allocation4 + $0x80] sm:$0xff]  ;;  %1499 = vmatprep.subr.bf16.mxu0 %v2683_v3  ;;  %v2693_v14 = vcombine.high %v114_v11, %v118_v12  ;;  %v122_v16 = vld [vmem:[#allocation4 + $0x88] sm:$0xff]  ;;  %1585 = vmatprep.subr.bf16.mxu1 %v2685_v8  ;;  %v2690_v18 = vcombine.low %v113_v6, %v117_v7 }
  0x5e   :  { %v125_v15 = vld [vmem:[#allocation4 + $0xa0] sm:$0xff]  ;;  %v126_v17 = vld [vmem:[#allocation4 + $0xa8] sm:$0xff]  ;;  %1500 = vmatpush1.bf16.msra.mxu0 %v2682_v5  ;;  %1586 = vmatpush1.bf16.msra.mxu1 %v2684_v9  ;;  %v2692_v19 = vcombine.low %v114_v11, %v118_v12 }
  0x5f   :  { %1501 = vmatprep.subr.bf16.mxu0 %v2691_v10  ;;  %v2699_v20 = vcombine.high %v121_v13, %v125_v15  ;;  %1587 = vmatprep.subr.bf16.mxu1 %v2693_v14  ;;  %v2701_v21 = vcombine.high %v122_v16, %v126_v17  ;;  %v129_v22 = vld [vmem:[#allocation4 + $0xc0] sm:$0xff]  ;;  %v130_v24 = vld [vmem:[#allocation4 + $0xc8] sm:$0xff]  ;;  %v2698_v26 = vcombine.low %v121_v13, %v125_v15 }
  0x60   :  { %v133_v23 = vld [vmem:[#allocation4 + $0xe0] sm:$0xff]  ;;  %v134_v25 = vld [vmem:[#allocation4 + $0xe8] sm:$0xff]  ;;  %v2700_v27 = vcombine.low %v122_v16, %v126_v17 }
  0x61   :  { %v2707_v28 = vcombine.high %v129_v22, %v133_v23  ;;  %v2709_v29 = vcombine.high %v130_v24, %v134_v25  ;;  %v137_v30 = vld [vmem:[#allocation4 + $0x100] sm:$0xff]  ;;  %v138_v32 = vld [vmem:[#allocation4 + $0x108] sm:$0xff]  ;;  %v2706_v34 = vcombine.low %v129_v22, %v133_v23  ;;  %v2708_v35 = vcombine.low %v130_v24, %v134_v25 }
  0x62   :  { %1502 = vmatpush1.bf16.msra.mxu0 %v2690_v18  ;;  %1588 = vmatpush1.bf16.msra.mxu1 %v2692_v19  ;;  %v141_v31 = vld [vmem:[#allocation4 + $0x120] sm:$0xff]  ;;  %v142_v33 = vld [vmem:[#allocation4 + $0x128] sm:$0xff] }
  0x63   :  { %1503 = vmatprep.subr.bf16.mxu0 %v2699_v20  ;;  %1589 = vmatprep.subr.bf16.mxu1 %v2701_v21  ;;  %v2715_v36 = vcombine.high %v137_v30, %v141_v31  ;;  %v2717_v37 = vcombine.high %v138_v32, %v142_v33  ;;  %v145_v38 = vld [vmem:[#allocation4 + $0x140] sm:$0xff]  ;;  %v146_v40 = vld [vmem:[#allocation4 + $0x148] sm:$0xff]  ;;  %v2714_v42 = vcombine.low %v137_v30, %v141_v31 }
  0x64   :  { %v149_v39 = vld [vmem:[#allocation4 + $0x160] sm:$0xff]  ;;  %v150_v41 = vld [vmem:[#allocation4 + $0x168] sm:$0xff]  ;;  %v2716_v43 = vcombine.low %v138_v32, %v142_v33 }
  0x65   :  { %v2723_v44 = vcombine.high %v145_v38, %v149_v39  ;;  %v2725_v45 = vcombine.high %v146_v40, %v150_v41  ;;  %v153_v46 = vld [vmem:[#allocation4 + $0x180] sm:$0xff]  ;;  %v154_v48 = vld [vmem:[#allocation4 + $0x188] sm:$0xff]  ;;  %v2722_v50 = vcombine.low %v145_v38, %v149_v39  ;;  %v2724_v51 = vcombine.low %v146_v40, %v150_v41 }
  0x66   :  { %1504 = vmatpush1.bf16.msra.mxu0 %v2698_v26  ;;  %1590 = vmatpush1.bf16.msra.mxu1 %v2700_v27  ;;  %v157_v47 = vld [vmem:[#allocation4 + $0x1a0] sm:$0xff]  ;;  %v158_v49 = vld [vmem:[#allocation4 + $0x1a8] sm:$0xff] }
  0x67   :  { %1505 = vmatprep.subr.bf16.mxu0 %v2707_v28  ;;  %1591 = vmatprep.subr.bf16.mxu1 %v2709_v29  ;;  %v2731_v52 = vcombine.high %v153_v46, %v157_v47  ;;  %v94_v53 = vld [vmem:[#allocation2 + $0x8] sm:$0xff]  ;;  %v2733_v55 = vcombine.high %v154_v48, %v158_v49  ;;  %v161_v56 = vld [vmem:[#allocation4 + $0x1c0] sm:$0xff]  ;;  %v2730_v61 = vcombine.low %v153_v46, %v157_v47 }
  0x68   :  { %v98_v54 = vld [vmem:[#allocation2 + $0x28] sm:$0xff]  ;;  %v165_v57 = vld [vmem:[#allocation4 + $0x1e0] sm:$0xff]  ;;  %v2732_v62 = vcombine.low %v154_v48, %v158_v49 }
  0x69   :  { %v3481_v58 = vpack.c.bf16 %v98_v54, %v94_v53  ;;  %v162_v59 = vld [vmem:[#allocation4 + $0x1c8] sm:$0xff]  ;;  %v2739_v63 = vcombine.high %v161_v56, %v165_v57  ;;  %v169_v1 = vld [vmem:[#allocation4 + $0x200] sm:$0xff]  ;;  %v2738_v5 = vcombine.low %v161_v56, %v165_v57 }
  0x6a   :  { %1506 = vmatpush1.bf16.msra.mxu0 %v2706_v34  ;;  %1592 = vmatpush1.bf16.msra.mxu1 %v2708_v35  ;;  %v166_v60 = vld [vmem:[#allocation4 + $0x1e8] sm:$0xff]  ;;  %v173_v2 = vld [vmem:[#allocation4 + $0x220] sm:$0xff] }
  0x6b   :  { %1507 = vmatprep.subr.bf16.mxu0 %v2715_v36  ;;  %1593 = vmatprep.subr.bf16.mxu1 %v2717_v37  ;;  %v2741_v0 = vcombine.high %v162_v59, %v166_v60  ;;  %v170_v3 = vld [vmem:[#allocation4 + $0x208] sm:$0xff]  ;;  %v2740_v6 = vcombine.low %v162_v59, %v166_v60  ;;  %v2747_v7 = vcombine.high %v169_v1, %v173_v2  ;;  %v177_v9 = vld [vmem:[#allocation4 + $0x240] sm:$0xff] }
  0x6c   :  { %1531 = vmatprep.mubr.bf16.mxu0 %v3481_v58  ;;  %1617 = vmatprep.mubr.bf16.mxu1 %v3481_v58  ;;  %v174_v4 = vld [vmem:[#allocation4 + $0x228] sm:$0xff]  ;;  %v181_v10 = vld [vmem:[#allocation4 + $0x260] sm:$0xff]  ;;  %v2746_v13 = vcombine.low %v169_v1, %v173_v2 }
  0x6d   :  { %v2749_v8 = vcombine.high %v170_v3, %v174_v4  ;;  %v178_v11 = vld [vmem:[#allocation4 + $0x248] sm:$0xff]  ;;  %v2748_v14 = vcombine.low %v170_v3, %v174_v4  ;;  %v2755_v15 = vcombine.high %v177_v9, %v181_v10  ;;  %v185_v17 = vld [vmem:[#allocation4 + $0x280] sm:$0xff]  ;;  %v2754_v21 = vcombine.low %v177_v9, %v181_v10 }
  0x6e   :  { %1508 = vmatpush1.bf16.msra.mxu0 %v2714_v42  ;;  %1594 = vmatpush1.bf16.msra.mxu1 %v2716_v43  ;;  %v182_v12 = vld [vmem:[#allocation4 + $0x268] sm:$0xff]  ;;  %v189_v18 = vld [vmem:[#allocation4 + $0x2a0] sm:$0xff] }
  0x6f   :  { %1509 = vmatprep.subr.bf16.mxu0 %v2723_v44  ;;  %1595 = vmatprep.subr.bf16.mxu1 %v2725_v45  ;;  %v2757_v16 = vcombine.high %v178_v11, %v182_v12  ;;  %v186_v19 = vld [vmem:[#allocation4 + $0x288] sm:$0xff]  ;;  %v2756_v22 = vcombine.low %v178_v11, %v182_v12  ;;  %v2763_v23 = vcombine.high %v185_v17, %v189_v18  ;;  %v193_v25 = vld [vmem:[#allocation4 + $0x2c0] sm:$0xff] }
  0x70   :  { %v190_v20 = vld [vmem:[#allocation4 + $0x2a8] sm:$0xff]  ;;  %v197_v26 = vld [vmem:[#allocation4 + $0x2e0] sm:$0xff]  ;;  %v2762_v29 = vcombine.low %v185_v17, %v189_v18  ;;  %v96_v17 = vld [vmem:[#allocation2 + $0x18] sm:$0xff] }
  0x71   :  { %v2765_v24 = vcombine.high %v186_v19, %v190_v20  ;;  %v194_v27 = vld [vmem:[#allocation4 + $0x2c8] sm:$0xff]  ;;  %v2764_v30 = vcombine.low %v186_v19, %v190_v20  ;;  %v2771_v31 = vcombine.high %v193_v25, %v197_v26  ;;  %v201_v33 = vld [vmem:[#allocation4 + $0x300] sm:$0xff]  ;;  %v2770_v37 = vcombine.low %v193_v25, %v197_v26  ;;  %v100_v18 = vld [vmem:[#allocation2 + $0x38] sm:$0xff] }
  0x72   :  { %1510 = vmatpush1.bf16.msra.mxu0 %v2722_v50  ;;  %1596 = vmatpush1.bf16.msra.mxu1 %v2724_v51  ;;  %v198_v28 = vld [vmem:[#allocation4 + $0x2e8] sm:$0xff]  ;;  %v205_v34 = vld [vmem:[#allocation4 + $0x320] sm:$0xff]  ;;  %v3487_v26 = vpack.c.bf16 %v100_v18, %v96_v17 }
  0x73   :  { %1511 = vmatprep.subr.bf16.mxu0 %v2731_v52  ;;  %1597 = vmatprep.subr.bf16.mxu1 %v2733_v55  ;;  %v2773_v32 = vcombine.high %v194_v27, %v198_v28  ;;  %v202_v35 = vld [vmem:[#allocation4 + $0x308] sm:$0xff]  ;;  %v2772_v38 = vcombine.low %v194_v27, %v198_v28  ;;  %v2779_v39 = vcombine.high %v201_v33, %v205_v34  ;;  %v209_v41 = vld [vmem:[#allocation4 + $0x340] sm:$0xff] }
  0x74   :  { %v206_v36 = vld [vmem:[#allocation4 + $0x328] sm:$0xff]  ;;  %v213_v42 = vld [vmem:[#allocation4 + $0x360] sm:$0xff]  ;;  %v2778_v45 = vcombine.low %v201_v33, %v205_v34 }
  0x75   :  { %v2781_v40 = vcombine.high %v202_v35, %v206_v36  ;;  %v210_v43 = vld [vmem:[#allocation4 + $0x348] sm:$0xff]  ;;  %v2780_v46 = vcombine.low %v202_v35, %v206_v36  ;;  %v2787_v47 = vcombine.high %v209_v41, %v213_v42  ;;  %v217_v49 = vld [vmem:[#allocation4 + $0x380] sm:$0xff]  ;;  %v2786_v53 = vcombine.low %v209_v41, %v213_v42 }
  0x76   :  { %1512 = vmatpush1.bf16.msra.mxu0 %v2730_v61  ;;  %1598 = vmatpush1.bf16.msra.mxu1 %v2732_v62  ;;  %v214_v44 = vld [vmem:[#allocation4 + $0x368] sm:$0xff]  ;;  %v221_v50 = vld [vmem:[#allocation4 + $0x3a0] sm:$0xff] }
  0x77   :  { %1513 = vmatprep.subr.bf16.mxu0 %v2739_v63  ;;  %1599 = vmatprep.subr.bf16.mxu1 %v2741_v0  ;;  %v2789_v48 = vcombine.high %v210_v43, %v214_v44  ;;  %v218_v51 = vld [vmem:[#allocation4 + $0x388] sm:$0xff]  ;;  %v2788_v54 = vcombine.low %v210_v43, %v214_v44  ;;  %v2795_v55 = vcombine.high %v217_v49, %v221_v50  ;;  %v225_v57 = vld [vmem:[#allocation4 + $0x3c0] sm:$0xff] }
  0x78   :  { %v222_v52 = vld [vmem:[#allocation4 + $0x3a8] sm:$0xff]  ;;  %v229_v59 = vld [vmem:[#allocation4 + $0x3e0] sm:$0xff]  ;;  %v2794_v62 = vcombine.low %v217_v49, %v221_v50 }
  0x79   :  { %v2797_v56 = vcombine.high %v218_v51, %v222_v52  ;;  %v226_v60 = vld [vmem:[#allocation4 + $0x3c8] sm:$0xff]  ;;  %v2796_v63 = vcombine.low %v218_v51, %v222_v52  ;;  %v2803_v0 = vcombine.high %v225_v57, %v229_v59  ;;  %v233_v2 = vld [vmem:[#allocation4 + $0x400] sm:$0xff] }
  0x7a   :  { %1514 = vmatpush1.bf16.msra.mxu0 %v2738_v5  ;;  %1600 = vmatpush1.bf16.msra.mxu1 %v2740_v6  ;;  %v230_v61 = vld [vmem:[#allocation4 + $0x3e8] sm:$0xff]  ;;  %v237_v3 = vld [vmem:[#allocation4 + $0x420] sm:$0xff]  ;;  %v2802_v6 = vcombine.low %v225_v57, %v229_v59 }
  0x7b   :  { %1515 = vmatprep.subr.bf16.mxu0 %v2747_v7  ;;  %1601 = vmatprep.subr.bf16.mxu1 %v2749_v8  ;;  %v2805_v1 = vcombine.high %v226_v60, %v230_v61  ;;  %v234_v4 = vld [vmem:[#allocation4 + $0x408] sm:$0xff]  ;;  %v93_v7 = vld [vmem:[#allocation2] sm:$0xff]  ;;  %v2804_v9 = vcombine.low %v226_v60, %v230_v61  ;;  %v2811_v10 = vcombine.high %v233_v2, %v237_v3 }
  0x7c   :  { %v238_v5 = vld [vmem:[#allocation4 + $0x428] sm:$0xff]  ;;  %v97_v8 = vld [vmem:[#allocation2 + $0x20] sm:$0xff]  ;;  %v2810_v19 = vcombine.low %v233_v2, %v237_v3 }
  0x7d   :  { %v2813_v11 = vcombine.high %v234_v4, %v238_v5  ;;  %v241_v12 = vld [vmem:[#allocation4 + $0x440] sm:$0xff]  ;;  %v2812_v20 = vcombine.low %v234_v4, %v238_v5  ;;  %v250_v25 = vld [vmem:[#allocation4 + $0x488] sm:$0xff] }
  0x7e   :  { %1516 = vmatpush1.bf16.msra.mxu0 %v2746_v13  ;;  %1602 = vmatpush1.bf16.msra.mxu1 %v2748_v14  ;;  %v245_v13 = vld [vmem:[#allocation4 + $0x460] sm:$0xff]  ;;  %v242_v14 = vld [vmem:[#allocation4 + $0x448] sm:$0xff] }
  0x7f   :  { %1517 = vmatprep.subr.bf16.mxu0 %v2755_v15  ;;  %1603 = vmatprep.subr.bf16.mxu1 %v2757_v16  ;;  %v3485_v15 = vpack.c.bf16 %v97_v8, %v93_v7  ;;  %v246_v16 = vld [vmem:[#allocation4 + $0x468] sm:$0xff]  ;;  %v2818_v28 = vcombine.low %v241_v12, %v245_v13  ;;  %v297_v8 = vld [vmem:[#allocation4 + $0x600] sm:$0xff] }
  0x80   :  { %v254_v27 = vld [vmem:[#allocation4 + $0x4a8] sm:$0xff]  ;;  %v305_v17 = vld [vmem:[#allocation4 + $0x640] sm:$0xff] }
  0x81   :  { %v258_v33 = vld [vmem:[#allocation4 + $0x4c8] sm:$0xff]  ;;  %v2829_v34 = vcombine.high %v250_v25, %v254_v27  ;;  %v309_v18 = vld [vmem:[#allocation4 + $0x660] sm:$0xff] }
  0x82   :  { %1518 = vmatpush1.bf16.msra.mxu0 %v2754_v21  ;;  %1604 = vmatpush1.bf16.msra.mxu1 %v2756_v22  ;;  %v2819_v21 = vcombine.high %v241_v12, %v245_v13  ;;  %v2821_v22 = vcombine.high %v242_v14, %v246_v16  ;;  %v262_v35 = vld [vmem:[#allocation4 + $0x4e8] sm:$0xff]  ;;  %v3359_v13 = vmov 65535  }
  0x83   :  { %1519 = vmatprep.subr.bf16.mxu0 %v2763_v23  ;;  %1605 = vmatprep.subr.bf16.mxu1 %v2765_v24  ;;  %v249_v23 = vld [vmem:[#allocation4 + $0x480] sm:$0xff]  ;;  %v266_v41 = vld [vmem:[#allocation4 + $0x508] sm:$0xff]  ;;  %v2837_v42 = vcombine.high %v258_v33, %v262_v35 }
  0x84   :  { %v253_v24 = vld [vmem:[#allocation4 + $0x4a0] sm:$0xff]  ;;  %v270_v43 = vld [vmem:[#allocation4 + $0x528] sm:$0xff] }
  0x85   :  { %v2826_v36 = vcombine.low %v249_v23, %v253_v24  ;;  %v274_v49 = vld [vmem:[#allocation4 + $0x548] sm:$0xff]  ;;  %v2845_v50 = vcombine.high %v266_v41, %v270_v43 }
  0x86   :  { %1520 = vmatpush1.bf16.msra.mxu0 %v2762_v29  ;;  %1606 = vmatpush1.bf16.msra.mxu1 %v2764_v30  ;;  %v2820_v29 = vcombine.low %v242_v14, %v246_v16  ;;  %v2827_v30 = vcombine.high %v249_v23, %v253_v24  ;;  %v278_v51 = vld [vmem:[#allocation4 + $0x568] sm:$0xff]  ;;  %v1473_v14 = vsel %vm1471_vm1, 4294967295, %v3359_v13  ;;  %v132_v13 = vld [vmem:[#allocation4 + $0xd8] sm:$0xff] }
  0x87   :  { %1521 = vmatprep.subr.bf16.mxu0 %v2771_v31  ;;  %1607 = vmatprep.subr.bf16.mxu1 %v2773_v32  ;;  %v257_v31 = vld [vmem:[#allocation4 + $0x4c0] sm:$0xff]  ;;  %v282_v57 = vld [vmem:[#allocation4 + $0x588] sm:$0xff]  ;;  %v2853_v59 = vcombine.high %v274_v49, %v278_v51 }
  0x88   :  { %v261_v32 = vld [vmem:[#allocation4 + $0x4e0] sm:$0xff]  ;;  %v286_v60 = vld [vmem:[#allocation4 + $0x5a8] sm:$0xff] }
  0x89   :  { %v2834_v44 = vcombine.low %v257_v31, %v261_v32  ;;  %v290_v2 = vld [vmem:[#allocation4 + $0x5c8] sm:$0xff]  ;;  %v2861_v3 = vcombine.high %v282_v57, %v286_v60 }
  0x8a   :  { %1522 = vmatpush1.bf16.msra.mxu0 %v2770_v37  ;;  %1608 = vmatpush1.bf16.msra.mxu1 %v2772_v38  ;;  %v2828_v37 = vcombine.low %v250_v25, %v254_v27  ;;  %v2835_v38 = vcombine.high %v257_v31, %v261_v32  ;;  %v294_v4 = vld [vmem:[#allocation4 + $0x5e8] sm:$0xff]  ;;  %v313_v25 = vld [vmem:[#allocation4 + $0x680] sm:$0xff] }
  0x8b   :  { %1523 = vmatprep.subr.bf16.mxu0 %v2779_v39  ;;  %1609 = vmatprep.subr.bf16.mxu1 %v2781_v40  ;;  %v265_v39 = vld [vmem:[#allocation4 + $0x500] sm:$0xff]  ;;  %v302_v12 = vld [vmem:[#allocation4 + $0x628] sm:$0xff] }
  0x8c   :  { %v269_v40 = vld [vmem:[#allocation4 + $0x520] sm:$0xff]  ;;  %v314_v31 = vld [vmem:[#allocation4 + $0x688] sm:$0xff] }
  0x8d   :  { %v2842_v52 = vcombine.low %v265_v39, %v269_v40  ;;  %v317_v27 = vld [vmem:[#allocation4 + $0x6a0] sm:$0xff]  ;;  %v318_v32 = vld [vmem:[#allocation4 + $0x6a8] sm:$0xff] }
  0x8e   :  { %1524 = vmatpush1.bf16.msra.mxu0 %v2778_v45  ;;  %1610 = vmatpush1.bf16.msra.mxu1 %v2780_v46  ;;  %v2836_v45 = vcombine.low %v258_v33, %v262_v35  ;;  %v2843_v46 = vcombine.high %v265_v39, %v269_v40  ;;  %v322_v33 = vld [vmem:[#allocation4 + $0x6c8] sm:$0xff]  ;;  %v2882_v35 = vcombine.low %v305_v17, %v309_v18  ;;  %v3497_v40 = vsel %vm1472_vm2, %v1473_v14, 0 }
  0x8f   :  { %1525 = vmatprep.subr.bf16.mxu0 %v2787_v47  ;;  %1611 = vmatprep.subr.bf16.mxu1 %v2789_v48  ;;  %v273_v47 = vld [vmem:[#allocation4 + $0x540] sm:$0xff]  ;;  %v2893_v39 = vcombine.high %v314_v31, %v318_v32 }
  0x90   :  { %v277_v48 = vld [vmem:[#allocation4 + $0x560] sm:$0xff] }
  0x91   :  { %v2850_v61 = vcombine.low %v273_v47, %v277_v48 }
  0x92   :  { %1526 = vmatpush1.bf16.msra.mxu0 %v2786_v53  ;;  %1612 = vmatpush1.bf16.msra.mxu1 %v2788_v54  ;;  %v2844_v53 = vcombine.low %v266_v41, %v270_v43  ;;  %v2851_v54 = vcombine.high %v273_v47, %v277_v48  ;;  %v2901_v41 = vcombine.high %v322_v33, %v322_v33  ;;  %v111_v48 = vld [vmem:[#allocation4 + $0x30] sm:$0xff] }
  0x93   :  { %1527 = vmatprep.subr.bf16.mxu0 %v2795_v55  ;;  %1613 = vmatprep.subr.bf16.mxu1 %v2797_v56  ;;  %v281_v55 = vld [vmem:[#allocation4 + $0x580] sm:$0xff]  ;;  %v2900_v47 = vcombine.low %v322_v33, %v322_v33 }
  0x94   :  { %v285_v56 = vld [vmem:[#allocation4 + $0x5a0] sm:$0xff] }
  0x95   :  { %v2858_v5 = vcombine.low %v281_v55, %v285_v56 }
  0x96   :  { %1528 = vmatpush1.bf16.msra.mxu0 %v2794_v62  ;;  %1614 = vmatpush1.bf16.msra.mxu1 %v2796_v63  ;;  %v2852_v62 = vcombine.low %v274_v49, %v278_v51  ;;  %v2859_v63 = vcombine.high %v281_v55, %v285_v56  ;;  %v108_v49 = vld [vmem:[#allocation4 + $0x18] sm:$0xff]  ;;  %v95_v51 = vld [vmem:[#allocation2 + $0x10] sm:$0xff]  ;;  %v1482_v56 = vand.u32 %v2900_v47, %v3497_v40 }
  0x97   :  { %1529 = vmatprep.subr.bf16.mxu0 %v2803_v0  ;;  %1615 = vmatprep.subr.bf16.mxu1 %v2805_v1  ;;  %v289_v0 = vld [vmem:[#allocation4 + $0x5c0] sm:$0xff]  ;;  %v115_v55 = vld [vmem:[#allocation4 + $0x50] sm:$0xff] }
  0x98   :  { %v293_v1 = vld [vmem:[#allocation4 + $0x5e0] sm:$0xff]  ;;  %v167_v47 = vld [vmem:[#allocation4 + $0x1f0] sm:$0xff] }
  0x99   :  { %v2867_v7 = vcombine.high %v289_v0, %v293_v1  ;;  %v2866_v16 = vcombine.low %v289_v0, %v293_v1  ;;  %v123_v1 = vld [vmem:[#allocation4 + $0x90] sm:$0xff] }
  0x9a   :  { %1530 = vmatpush1.bf16.msra.mxu0 %v2802_v6  ;;  %1616 = vmatpush1.bf16.msra.mxu1 %v2804_v9  ;;  %v2860_v6 = vcombine.low %v282_v57, %v286_v60  ;;  %v2869_v9 = vcombine.high %v290_v2, %v294_v4  ;;  %v116_v60 = vld [vmem:[#allocation4 + $0x58] sm:$0xff] }
  0x9b   :  { %1542 = vmatprep.subr.bf16.mxu0 %v2811_v10  ;;  %1628 = vmatprep.subr.bf16.mxu1 %v2813_v11  ;;  %v301_v10 = vld [vmem:[#allocation4 + $0x620] sm:$0xff]  ;;  %v298_v11 = vld [vmem:[#allocation4 + $0x608] sm:$0xff] }
  0x9c   :  { %v2877_v23 = vcombine.high %v298_v11, %v302_v12  ;;  %v2874_v24 = vcombine.low %v297_v8, %v301_v10 }
  0x9d   :  { %1532 = vmatmul.mubr.bf16.vlgmr.msra.gmra.mrb[0].mxu0 %v3485_v15  ;;  %1618 = vmatmul.mubr.bf16.vlgmr.msra.gmra.mrb[0].mxu1 %v3485_v15 }
  0x9e   :  { %1543 = vmatpush1.bf16.msra.mxu0 %v2810_v19  ;;  %1629 = vmatpush1.bf16.msra.mxu1 %v2812_v20  ;;  %v2868_v19 = vcombine.low %v290_v2, %v294_v4  ;;  %v2875_v20 = vcombine.high %v297_v8, %v301_v10  ;;  %v127_v4 = vld [vmem:[#allocation4 + $0xb0] sm:$0xff] }
  0x9f   :  { %1544 = vmatprep.subr.bf16.mxu0 %v2819_v21  ;;  %1630 = vmatprep.subr.bf16.mxu1 %v2821_v22  ;;  %v306_v21 = vld [vmem:[#allocation4 + $0x648] sm:$0xff] }
  0xa0   :  { %2906 = vmatprep.mubr.msk.bf16.mxu0 %vm1467_vm0, %v3487_v26  ;;  %2907 = vmatprep.mubr.msk.bf16.mxu1 %vm1467_vm0, %v3487_v26  ;;  %v310_v22 = vld [vmem:[#allocation4 + $0x668] sm:$0xff] }
  0xa2   :  { %1545 = vmatpush1.bf16.msra.mxu0 %v2818_v28  ;;  %1631 = vmatpush1.bf16.msra.mxu1 %v2820_v29  ;;  %v321_v28 = vld [vmem:[#allocation4 + $0x6c0] sm:$0xff]  ;;  %v2876_v29 = vcombine.low %v298_v11, %v302_v12  ;;  %v2703_v11 = vcombine.high %v123_v1, %v127_v4  ;;  %v135_v12 = vld [vmem:[#allocation4 + $0xf0] sm:$0xff] }
  0xa3   :  { %1546 = vmatprep.subr.bf16.mxu0 %v2827_v30  ;;  %1632 = vmatprep.subr.bf16.mxu1 %v2829_v34  ;;  %v2883_v30 = vcombine.high %v305_v17, %v309_v18  ;;  %v2885_v34 = vcombine.high %v306_v21, %v310_v22  ;;  %v2898_v43 = vcombine.low %v321_v28, %v321_v28  ;;  %v139_v18 = vld [vmem:[#allocation4 + $0x110] sm:$0xff] }
  0xa4   :  { %v2702_v17 = vcombine.low %v123_v1, %v127_v4  ;;  %v183_v1 = vld [vmem:[#allocation4 + $0x270] sm:$0xff] }
  0xa6   :  { %1547 = vmatpush1.bf16.msra.mxu0 %v2826_v36  ;;  %1633 = vmatpush1.bf16.msra.mxu1 %v2828_v37  ;;  %v2884_v36 = vcombine.low %v306_v21, %v310_v22  ;;  %v2891_v37 = vcombine.high %v313_v25, %v317_v27  ;;  %v140_v22 = vld [vmem:[#allocation4 + $0x118] sm:$0xff] }
  0xa7   :  { %1548 = vmatprep.subr.bf16.mxu0 %v2835_v38  ;;  %1634 = vmatprep.subr.bf16.mxu1 %v2837_v42  ;;  %v2899_v38 = vcombine.high %v321_v28, %v321_v28  ;;  %v2890_v42 = vcombine.low %v313_v25, %v317_v27  ;;  %v147_v27 = vld [vmem:[#allocation4 + $0x150] sm:$0xff] }
  0xa8   :  { %v151_v28 = vld [vmem:[#allocation4 + $0x170] sm:$0xff] }
  0xaa   :  { %1549 = vmatpush1.bf16.msra.mxu0 %v2834_v44  ;;  %1635 = vmatpush1.bf16.msra.mxu1 %v2836_v45  ;;  %v107_v44 = vld [vmem:[#allocation4 + $0x10] sm:$0xff]  ;;  %v2892_v45 = vcombine.low %v314_v31, %v318_v32  ;;  %v152_v31 = vld [vmem:[#allocation4 + $0x178] sm:$0xff] }
  0xab   :  { %1550 = vmatprep.subr.bf16.mxu0 %v2843_v46  ;;  %1636 = vmatprep.subr.bf16.mxu1 %v2845_v50  ;;  %v1479_v46 = vand.u32 %v2899_v38, %v3497_v40  ;;  %v1485_v50 = vand.u32 %v2901_v41, %v3497_v40  ;;  %v2687_v57 = vcombine.high %v107_v44, %v111_v48  ;;  %v156_v38 = vld [vmem:[#allocation4 + $0x198] sm:$0xff] }
  0xac   :  { %v2686_v0 = vcombine.low %v107_v44, %v111_v48  ;;  %v164_v48 = vld [vmem:[#allocation4 + $0x1d8] sm:$0xff] }
  0xae   :  { %1551 = vmatpush1.bf16.msra.mxu0 %v2842_v52  ;;  %1637 = vmatpush1.bf16.msra.mxu1 %v2844_v53  ;;  %v99_v52 = vld [vmem:[#allocation2 + $0x30] sm:$0xff]  ;;  %v112_v53 = vld [vmem:[#allocation4 + $0x38] sm:$0xff] }
  0xaf   :  { %1552 = vmatprep.subr.bf16.mxu0 %v2851_v54  ;;  %1638 = vmatprep.subr.bf16.mxu1 %v2853_v59  ;;  %v1476_v54 = vand.u32 %v2898_v43, %v3497_v40  ;;  %v119_v59 = vld [vmem:[#allocation4 + $0x70] sm:$0xff]  ;;  %v2688_v2 = vcombine.low %v108_v49, %v112_v53 }
  0xb0   :  { %v2694_v8 = vcombine.low %v115_v55, %v119_v59 }
  0xb2   :  { %1553 = vmatpush1.bf16.msra.mxu0 %v2850_v61  ;;  %1639 = vmatpush1.bf16.msra.mxu1 %v2852_v62  ;;  %v2689_v61 = vcombine.high %v108_v49, %v112_v53  ;;  %v120_v62 = vld [vmem:[#allocation4 + $0x78] sm:$0xff] }
  0xb3   :  { %1554 = vmatprep.subr.bf16.mxu0 %v2859_v63  ;;  %1640 = vmatprep.subr.bf16.mxu1 %v2861_v3  ;;  %v3503_v63 = vpack.c.bf16 %v99_v52, %v95_v51  ;;  %v2695_v3 = vcombine.high %v115_v55, %v119_v59  ;;  %v2696_v10 = vcombine.low %v116_v60, %v120_v62  ;;  %v168_v49 = vld [vmem:[#allocation4 + $0x1f8] sm:$0xff]  ;;  %v175_v55 = vld [vmem:[#allocation4 + $0x230] sm:$0xff] }
  0xb4   :  { %v2745_v53 = vcombine.high %v164_v48, %v168_v49 }
  0xb6   :  { %1555 = vmatpush1.bf16.msra.mxu0 %v2858_v5  ;;  %1641 = vmatpush1.bf16.msra.mxu1 %v2860_v6  ;;  %v124_v5 = vld [vmem:[#allocation4 + $0x98] sm:$0xff]  ;;  %v2697_v6 = vcombine.high %v116_v60, %v120_v62  ;;  %v2744_v60 = vcombine.low %v164_v48, %v168_v49 }
  0xb7   :  { %1556 = vmatprep.subr.bf16.mxu0 %v2867_v7  ;;  %1642 = vmatprep.subr.bf16.mxu1 %v2869_v9  ;;  %v128_v7 = vld [vmem:[#allocation4 + $0xb8] sm:$0xff]  ;;  %v131_v9 = vld [vmem:[#allocation4 + $0xd0] sm:$0xff] }
  0xb8   :  { %v2705_v14 = vcombine.high %v124_v5, %v128_v7  ;;  %v2711_v21 = vcombine.high %v131_v9, %v135_v12  ;;  %v2710_v25 = vcombine.low %v131_v9, %v135_v12  ;;  %v191_v9 = vld [vmem:[#allocation4 + $0x2b0] sm:$0xff] }
  0xba   :  { %1557 = vmatpush1.bf16.msra.mxu0 %v2866_v16  ;;  %1643 = vmatpush1.bf16.msra.mxu1 %v2868_v19  ;;  %v136_v16 = vld [vmem:[#allocation4 + $0xf8] sm:$0xff]  ;;  %v143_v19 = vld [vmem:[#allocation4 + $0x130] sm:$0xff] }
  0xbb   :  { %1558 = vmatprep.subr.bf16.mxu0 %v2875_v20  ;;  %1644 = vmatprep.subr.bf16.mxu1 %v2877_v23  ;;  %v2704_v20 = vcombine.low %v124_v5, %v128_v7  ;;  %v2713_v23 = vcombine.high %v132_v13, %v136_v16  ;;  %v2718_v33 = vcombine.low %v139_v18, %v143_v19 }
  0xbe   :  { %1559 = vmatpush1.bf16.msra.mxu0 %v2874_v24  ;;  %1645 = vmatpush1.bf16.msra.mxu1 %v2876_v29  ;;  %v144_v24 = vld [vmem:[#allocation4 + $0x138] sm:$0xff]  ;;  %v2712_v29 = vcombine.low %v132_v13, %v136_v16 }
  0xbf   :  { %1560 = vmatprep.subr.bf16.mxu0 %v2883_v30  ;;  %1646 = vmatprep.subr.bf16.mxu1 %v2885_v34  ;;  %v148_v30 = vld [vmem:[#allocation4 + $0x158] sm:$0xff]  ;;  %v2721_v32 = vcombine.high %v140_v22, %v144_v24  ;;  %v155_v34 = vld [vmem:[#allocation4 + $0x190] sm:$0xff] }
  0xc0   :  { %v2729_v41 = vcombine.high %v148_v30, %v152_v31  ;;  %v2728_v43 = vcombine.low %v148_v30, %v152_v31 }
  0xc2   :  { %1561 = vmatpush1.bf16.msra.mxu0 %v2882_v35  ;;  %1647 = vmatpush1.bf16.msra.mxu1 %v2884_v36  ;;  %v159_v35 = vld [vmem:[#allocation4 + $0x1b0] sm:$0xff]  ;;  %v2720_v36 = vcombine.low %v140_v22, %v144_v24 }
  0xc3   :  { %1562 = vmatprep.subr.bf16.mxu0 %v2891_v37  ;;  %1648 = vmatprep.subr.bf16.mxu1 %v2893_v39  ;;  %v2727_v37 = vcombine.high %v147_v27, %v151_v28  ;;  %v160_v39 = vld [vmem:[#allocation4 + $0x1b8] sm:$0xff]  ;;  %v2735_v44 = vcombine.high %v155_v34, %v159_v35 }
  0xc4   :  { %v2736_v51 = vcombine.low %v156_v38, %v160_v39 }
  0xc6   :  { %1563 = vmatpush1.bf16.msra.mxu0 %v2890_v42  ;;  %1649 = vmatpush1.bf16.msra.mxu1 %v2892_v45  ;;  %v2726_v42 = vcombine.low %v147_v27, %v151_v28  ;;  %v2737_v45 = vcombine.high %v156_v38, %v160_v39  ;;  %v207_v27 = vld [vmem:[#allocation4 + $0x330] sm:$0xff]  ;;  %v204_v28 = vld [vmem:[#allocation4 + $0x318] sm:$0xff] }
  0xc7   :  { %1564 = vmatprep.subr.bf16.mxu0 %v1479_v46  ;;  %1650 = vmatprep.subr.bf16.mxu1 %v1485_v50  ;;  %v163_v46 = vld [vmem:[#allocation4 + $0x1d0] sm:$0xff]  ;;  %v2734_v50 = vcombine.low %v155_v34, %v159_v35  ;;  %v212_v35 = vld [vmem:[#allocation4 + $0x358] sm:$0xff] }
  0xc8   :  { %v2743_v52 = vcombine.high %v163_v46, %v167_v47  ;;  %v2742_v59 = vcombine.low %v163_v46, %v167_v47  ;;  %v215_v34 = vld [vmem:[#allocation4 + $0x370] sm:$0xff] }
  0xca   :  { %1565 = vmatpush1.bf16.msra.mxu0 %v1476_v54  ;;  %1651 = vmatpush1.bf16.msra.mxu1 %v1482_v56  ;;  %v171_v54 = vld [vmem:[#allocation4 + $0x210] sm:$0xff]  ;;  %v172_v56 = vld [vmem:[#allocation4 + $0x218] sm:$0xff] }
  0xcb   :  { %1671 = vmatprep.subr.bf16.mxu0 %v2687_v57  ;;  %1757 = vmatprep.subr.bf16.mxu1 %v2689_v61  ;;  %v176_v57 = vld [vmem:[#allocation4 + $0x238] sm:$0xff]  ;;  %v2751_v61 = vcombine.high %v171_v54, %v175_v55  ;;  %v2750_v4 = vcombine.low %v171_v54, %v175_v55 }
  0xcc   :  { %v2753_v62 = vcombine.high %v172_v56, %v176_v57  ;;  %v2752_v5 = vcombine.low %v172_v56, %v176_v57 }
  0xcd   :  { %1575 = vmatmul.mubr.bf16.vlgmr.msra.gmra.mrb[0].mxu0 %v3503_v63  ;;  %1661 = vmatmul.mubr.bf16.vlgmr.msra.gmra.mrb[0].mxu1 %v3503_v63 }
  0xce   :  { %1672 = vmatpush1.bf16.msra.mxu0 %v2686_v0  ;;  %1758 = vmatpush1.bf16.msra.mxu1 %v2688_v2  ;;  %v179_v0 = vld [vmem:[#allocation4 + $0x250] sm:$0xff]  ;;  %v180_v2 = vld [vmem:[#allocation4 + $0x258] sm:$0xff] }
  0xcf   :  { %1673 = vmatprep.subr.bf16.mxu0 %v2695_v3  ;;  %1759 = vmatprep.subr.bf16.mxu1 %v2697_v6  ;;  %v184_v3 = vld [vmem:[#allocation4 + $0x278] sm:$0xff]  ;;  %v2759_v6 = vcombine.high %v179_v0, %v183_v1  ;;  %v2758_v12 = vcombine.low %v179_v0, %v183_v1 }
  0xd0   :  { %1703 = vmatprep.mubr.bf16.mxu0 %v3481_v58  ;;  %1789 = vmatprep.mubr.bf16.mxu1 %v3481_v58  ;;  %v2719_v58 = vcombine.high %v139_v18, %v143_v19  ;;  %v2761_v7 = vcombine.high %v180_v2, %v184_v3  ;;  %v2760_v13 = vcombine.low %v180_v2, %v184_v3  ;;  %v199_v18 = vld [vmem:[#allocation4 + $0x2f0] sm:$0xff]  ;;  %v196_v19 = vld [vmem:[#allocation4 + $0x2d8] sm:$0xff] }
  0xd2   :  { %1674 = vmatpush1.bf16.msra.mxu0 %v2694_v8  ;;  %1760 = vmatpush1.bf16.msra.mxu1 %v2696_v10  ;;  %v187_v8 = vld [vmem:[#allocation4 + $0x290] sm:$0xff]  ;;  %v188_v10 = vld [vmem:[#allocation4 + $0x298] sm:$0xff] }
  0xd3   :  { %1675 = vmatprep.subr.bf16.mxu0 %v2703_v11  ;;  %1761 = vmatprep.subr.bf16.mxu1 %v2705_v14  ;;  %v192_v11 = vld [vmem:[#allocation4 + $0x2b8] sm:$0xff]  ;;  %v2767_v14 = vcombine.high %v187_v8, %v191_v9 }
  0xd4   :  { %v2769_v16 = vcombine.high %v188_v10, %v192_v11  ;;  %v2768_v22 = vcombine.low %v188_v10, %v192_v11 }
  0xd6   :  { %1676 = vmatpush1.bf16.msra.mxu0 %v2702_v17  ;;  %1762 = vmatpush1.bf16.msra.mxu1 %v2704_v20  ;;  %v195_v17 = vld [vmem:[#allocation4 + $0x2d0] sm:$0xff]  ;;  %v200_v20 = vld [vmem:[#allocation4 + $0x2f8] sm:$0xff] }
  0xd7   :  { %1677 = vmatprep.subr.bf16.mxu0 %v2711_v21  ;;  %1763 = vmatprep.subr.bf16.mxu1 %v2713_v23  ;;  %v2766_v21 = vcombine.low %v187_v8, %v191_v9  ;;  %v2775_v23 = vcombine.high %v195_v17, %v199_v18  ;;  %v2777_v24 = vcombine.high %v196_v19, %v200_v20 }
  0xd8   :  { %v2776_v30 = vcombine.low %v196_v19, %v200_v20 }
  0xda   :  { %1678 = vmatpush1.bf16.msra.mxu0 %v2710_v25  ;;  %1764 = vmatpush1.bf16.msra.mxu1 %v2712_v29  ;;  %v203_v25 = vld [vmem:[#allocation4 + $0x310] sm:$0xff]  ;;  %v208_v29 = vld [vmem:[#allocation4 + $0x338] sm:$0xff] }
  0xdb   :  { %1679 = vmatprep.subr.bf16.mxu0 %v2719_v58  ;;  %1765 = vmatprep.subr.bf16.mxu1 %v2721_v32  ;;  %v2774_v58 = vcombine.low %v195_v17, %v199_v18  ;;  %v2783_v31 = vcombine.high %v203_v25, %v207_v27  ;;  %v2785_v32 = vcombine.high %v204_v28, %v208_v29 }
  0xdc   :  { %v2784_v38 = vcombine.low %v204_v28, %v208_v29  ;;  %v267_v29 = vld [vmem:[#allocation4 + $0x510] sm:$0xff] }
  0xde   :  { %1680 = vmatpush1.bf16.msra.mxu0 %v2718_v33  ;;  %1766 = vmatpush1.bf16.msra.mxu1 %v2720_v36  ;;  %v211_v33 = vld [vmem:[#allocation4 + $0x350] sm:$0xff]  ;;  %v216_v36 = vld [vmem:[#allocation4 + $0x378] sm:$0xff] }
  0xdf   :  { %1681 = vmatprep.subr.bf16.mxu0 %v2727_v37  ;;  %1767 = vmatprep.subr.bf16.mxu1 %v2729_v41  ;;  %v2782_v37 = vcombine.low %v203_v25, %v207_v27  ;;  %v2791_v39 = vcombine.high %v211_v33, %v215_v34  ;;  %v2793_v41 = vcombine.high %v212_v35, %v216_v36 }
  0xe0   :  { %v2790_v46 = vcombine.low %v211_v33, %v215_v34  ;;  %v2792_v47 = vcombine.low %v212_v35, %v216_v36  ;;  %v275_v35 = vld [vmem:[#allocation4 + $0x550] sm:$0xff] }
  0xe1   :  { %v279_v36 = vld [vmem:[#allocation4 + $0x570] sm:$0xff] }
  0xe2   :  { %1682 = vmatpush1.bf16.msra.mxu0 %v2726_v42  ;;  %1768 = vmatpush1.bf16.msra.mxu1 %v2728_v43  ;;  %v219_v42 = vld [vmem:[#allocation4 + $0x390] sm:$0xff] }
  0xe3   :  { %1683 = vmatprep.subr.bf16.mxu0 %v2735_v44  ;;  %1769 = vmatprep.subr.bf16.mxu1 %v2737_v45  ;;  %v223_v43 = vld [vmem:[#allocation4 + $0x3b0] sm:$0xff]  ;;  %v220_v44 = vld [vmem:[#allocation4 + $0x398] sm:$0xff] }
  0xe4   :  { %v224_v45 = vld [vmem:[#allocation4 + $0x3b8] sm:$0xff]  ;;  %v2799_v48 = vcombine.high %v219_v42, %v223_v43  ;;  %v2798_v54 = vcombine.low %v219_v42, %v223_v43  ;;  %v2855_v42 = vcombine.high %v275_v35, %v279_v36 }
  0xe5   :  { %v2801_v49 = vcombine.high %v220_v44, %v224_v45  ;;  %v2800_v55 = vcombine.low %v220_v44, %v224_v45  ;;  %v283_v44 = vld [vmem:[#allocation4 + $0x590] sm:$0xff] }
  0xe6   :  { %1684 = vmatpush1.bf16.msra.mxu0 %v2734_v50  ;;  %1770 = vmatpush1.bf16.msra.mxu1 %v2736_v51  ;;  %v227_v50 = vld [vmem:[#allocation4 + $0x3d0] sm:$0xff] }
  0xe7   :  { %1685 = vmatprep.subr.bf16.mxu0 %v2743_v52  ;;  %1771 = vmatprep.subr.bf16.mxu1 %v2745_v53  ;;  %v231_v51 = vld [vmem:[#allocation4 + $0x3f0] sm:$0xff]  ;;  %v228_v52 = vld [vmem:[#allocation4 + $0x3d8] sm:$0xff] }
  0xe8   :  { %v232_v53 = vld [vmem:[#allocation4 + $0x3f8] sm:$0xff]  ;;  %v2807_v56 = vcombine.high %v227_v50, %v231_v51  ;;  %v2806_v0 = vcombine.low %v227_v50, %v231_v51  ;;  %v287_v45 = vld [vmem:[#allocation4 + $0x5b0] sm:$0xff] }
  0xe9   :  { %v2809_v57 = vcombine.high %v228_v52, %v232_v53  ;;  %v2808_v1 = vcombine.low %v228_v52, %v232_v53  ;;  %v2863_v50 = vcombine.high %v283_v44, %v287_v45  ;;  %v291_v52 = vld [vmem:[#allocation4 + $0x5d0] sm:$0xff] }
  0xea   :  { %1686 = vmatpush1.bf16.msra.mxu0 %v2742_v59  ;;  %1772 = vmatpush1.bf16.msra.mxu1 %v2744_v60  ;;  %v235_v59 = vld [vmem:[#allocation4 + $0x410] sm:$0xff] }
  0xeb   :  { %1687 = vmatprep.subr.bf16.mxu0 %v2751_v61  ;;  %1773 = vmatprep.subr.bf16.mxu1 %v2753_v62  ;;  %v239_v60 = vld [vmem:[#allocation4 + $0x430] sm:$0xff]  ;;  %v236_v61 = vld [vmem:[#allocation4 + $0x418] sm:$0xff] }
  0xec   :  { %v240_v62 = vld [vmem:[#allocation4 + $0x438] sm:$0xff]  ;;  %v2815_v2 = vcombine.high %v235_v59, %v239_v60  ;;  %v2814_v8 = vcombine.low %v235_v59, %v239_v60  ;;  %v295_v53 = vld [vmem:[#allocation4 + $0x5f0] sm:$0xff] }
  0xed   :  { %v2817_v3 = vcombine.high %v236_v61, %v240_v62  ;;  %v2816_v9 = vcombine.low %v236_v61, %v240_v62  ;;  %v2871_v59 = vcombine.high %v291_v52, %v295_v53  ;;  %v299_v61 = vld [vmem:[#allocation4 + $0x610] sm:$0xff] }
  0xee   :  { %1688 = vmatpush1.bf16.msra.mxu0 %v2750_v4  ;;  %1774 = vmatpush1.bf16.msra.mxu1 %v2752_v5  ;;  %v243_v4 = vld [vmem:[#allocation4 + $0x450] sm:$0xff] }
  0xef   :  { %1689 = vmatprep.subr.bf16.mxu0 %v2759_v6  ;;  %1775 = vmatprep.subr.bf16.mxu1 %v2761_v7  ;;  %v247_v5 = vld [vmem:[#allocation4 + $0x470] sm:$0xff]  ;;  %v244_v6 = vld [vmem:[#allocation4 + $0x458] sm:$0xff] }
  0xf0   :  { %v248_v7 = vld [vmem:[#allocation4 + $0x478] sm:$0xff]  ;;  %v2823_v10 = vcombine.high %v243_v4, %v247_v5  ;;  %v2822_v17 = vcombine.low %v243_v4, %v247_v5  ;;  %v303_v62 = vld [vmem:[#allocation4 + $0x630] sm:$0xff] }
  0xf1   :  { %v2825_v11 = vcombine.high %v244_v6, %v248_v7  ;;  %v2824_v18 = vcombine.low %v244_v6, %v248_v7  ;;  %v2879_v4 = vcombine.high %v299_v61, %v303_v62  ;;  %v307_v6 = vld [vmem:[#allocation4 + $0x650] sm:$0xff] }
  0xf2   :  { %1690 = vmatpush1.bf16.msra.mxu0 %v2758_v12  ;;  %1776 = vmatpush1.bf16.msra.mxu1 %v2760_v13  ;;  %v251_v12 = vld [vmem:[#allocation4 + $0x490] sm:$0xff] }
  0xf3   :  { %1691 = vmatprep.subr.bf16.mxu0 %v2767_v14  ;;  %1777 = vmatprep.subr.bf16.mxu1 %v2769_v16  ;;  %v255_v13 = vld [vmem:[#allocation4 + $0x4b0] sm:$0xff]  ;;  %v252_v14 = vld [vmem:[#allocation4 + $0x498] sm:$0xff] }
  0xf4   :  { %v256_v16 = vld [vmem:[#allocation4 + $0x4b8] sm:$0xff]  ;;  %v2831_v19 = vcombine.high %v251_v12, %v255_v13  ;;  %v2830_v25 = vcombine.low %v251_v12, %v255_v13  ;;  %v311_v7 = vld [vmem:[#allocation4 + $0x670] sm:$0xff] }
  0xf5   :  { %v2833_v20 = vcombine.high %v252_v14, %v256_v16  ;;  %v2887_v12 = vcombine.high %v307_v6, %v311_v7 }
  0xf6   :  { %1692 = vmatpush1.bf16.msra.mxu0 %v2766_v21  ;;  %1778 = vmatpush1.bf16.msra.mxu1 %v2768_v22  ;;  %v259_v21 = vld [vmem:[#allocation4 + $0x4d0] sm:$0xff] }
  0xf7   :  { %1693 = vmatprep.subr.bf16.mxu0 %v2775_v23  ;;  %1779 = vmatprep.subr.bf16.mxu1 %v2777_v24  ;;  %v263_v22 = vld [vmem:[#allocation4 + $0x4f0] sm:$0xff]  ;;  %v260_v23 = vld [vmem:[#allocation4 + $0x4d8] sm:$0xff] }
  0xf8   :  { %v264_v24 = vld [vmem:[#allocation4 + $0x4f8] sm:$0xff]  ;;  %v2839_v27 = vcombine.high %v259_v21, %v263_v22 }
  0xf9   :  { %v2841_v28 = vcombine.high %v260_v23, %v264_v24  ;;  %v2840_v33 = vcombine.low %v260_v23, %v264_v24 }
  0xfa   :  { %1694 = vmatpush1.bf16.msra.mxu0 %v2774_v58  ;;  %1780 = vmatpush1.bf16.msra.mxu1 %v2776_v30  ;;  %v271_v58 = vld [vmem:[#allocation4 + $0x530] sm:$0xff]  ;;  %v268_v30 = vld [vmem:[#allocation4 + $0x518] sm:$0xff] }
  0xfb   :  { %1695 = vmatprep.subr.bf16.mxu0 %v2783_v31  ;;  %1781 = vmatprep.subr.bf16.mxu1 %v2785_v32  ;;  %v272_v31 = vld [vmem:[#allocation4 + $0x538] sm:$0xff]  ;;  %v2838_v32 = vcombine.low %v259_v21, %v263_v22  ;;  %v2847_v34 = vcombine.high %v267_v29, %v271_v58  ;;  %v2886_v21 = vcombine.low %v307_v6, %v311_v7  ;;  %v3524_v7 = vld [vmem:[#allocation6] sm:$0xff] }
  0xfe   :  { %1696 = vmatpush1.bf16.msra.mxu0 %v2782_v37  ;;  %1782 = vmatpush1.bf16.msra.mxu1 %v2784_v38  ;;  %v276_v37 = vld [vmem:[#allocation4 + $0x558] sm:$0xff] }
  0xff   :  { %1697 = vmatprep.subr.bf16.mxu0 %v2791_v39  ;;  %1783 = vmatprep.subr.bf16.mxu1 %v2793_v41  ;;  %v280_v38 = vld [vmem:[#allocation4 + $0x578] sm:$0xff]  ;;  %v2846_v39 = vcombine.low %v267_v29, %v271_v58  ;;  %v2848_v41 = vcombine.low %v268_v30, %v272_v31 }
 0x100   :  { %v2857_v43 = vcombine.high %v276_v37, %v280_v38 }
 0x102   :  { %1698 = vmatpush1.bf16.msra.mxu0 %v2790_v46  ;;  %1784 = vmatpush1.bf16.msra.mxu1 %v2792_v47  ;;  %v284_v46 = vld [vmem:[#allocation4 + $0x598] sm:$0xff] }
 0x103   :  { %1699 = vmatprep.subr.bf16.mxu0 %v2799_v48  ;;  %1785 = vmatprep.subr.bf16.mxu1 %v2801_v49  ;;  %v288_v47 = vld [vmem:[#allocation4 + $0x5b8] sm:$0xff]  ;;  %v2854_v48 = vcombine.low %v275_v35, %v279_v36  ;;  %v2856_v49 = vcombine.low %v276_v37, %v280_v38  ;;  %v3164_v35 = vld [vmem:[#allocation7] sm:$0xff]   ;;  %v3166_v37 = vld [vmem:[#allocation7 + $0x48] sm:$0xff]  }
 0x104   :  { %v2865_v51 = vcombine.high %v284_v46, %v288_v47  ;;  %v3165_v36 = vld [vmem:[#allocation7 + $0x80] sm:$0xff]   ;;  %v3167_v38 = vld [vmem:[#allocation7 + $0xc8] sm:$0xff]  }
 0x106   :  { %1700 = vmatpush1.bf16.msra.mxu0 %v2798_v54  ;;  %1786 = vmatpush1.bf16.msra.mxu1 %v2800_v55  ;;  %v292_v54 = vld [vmem:[#allocation4 + $0x5d8] sm:$0xff] }
 0x107   :  { %1701 = vmatprep.subr.bf16.mxu0 %v2807_v56  ;;  %1787 = vmatprep.subr.bf16.mxu1 %v2809_v57  ;;  %v296_v55 = vld [vmem:[#allocation4 + $0x5f8] sm:$0xff]  ;;  %v2862_v56 = vcombine.low %v283_v44, %v287_v45  ;;  %v2864_v57 = vcombine.low %v284_v46, %v288_v47  ;;  %v3174_v45 = vld [vmem:[#allocation7 + $0x58] sm:$0xff]  }
 0x108   :  { %v2873_v60 = vcombine.high %v292_v54, %v296_v55  ;;  %v3173_v44 = vld [vmem:[#allocation7 + $0x90] sm:$0xff]   ;;  %v3175_v46 = vld [vmem:[#allocation7 + $0xd8] sm:$0xff]  }
 0x109   :  { %v3176_v47 = vld [vmem:[#allocation7 + $0x18] sm:$0xff]  }
 0x10a   :  { %1702 = vmatpush1.bf16.msra.mxu0 %v2806_v0  ;;  %1788 = vmatpush1.bf16.msra.mxu1 %v2808_v1  ;;  %v300_v0 = vld [vmem:[#allocation4 + $0x618] sm:$0xff] }
 0x10b   :  { %1714 = vmatprep.subr.bf16.mxu0 %v2815_v2  ;;  %1800 = vmatprep.subr.bf16.mxu1 %v2817_v3  ;;  %v304_v1 = vld [vmem:[#allocation4 + $0x638] sm:$0xff]  ;;  %v2870_v2 = vcombine.low %v291_v52, %v295_v53  ;;  %v2872_v3 = vcombine.low %v292_v54, %v296_v55  ;;  %v3182_v52 = vld [vmem:[#allocation7 + $0x68] sm:$0xff]  }
 0x10c   :  { %v2881_v5 = vcombine.high %v300_v0, %v304_v1  ;;  %v3183_v53 = vld [vmem:[#allocation7 + $0xe8] sm:$0xff]  }
 0x10d   :  { %1704 = vmatmul.mubr.bf16.vlgmr.msra.gmra.mrb[4].mxu0 %v3485_v15  ;;  %1790 = vmatmul.mubr.bf16.vlgmr.msra.gmra.mrb[4].mxu1 %v3485_v15  ;;  %v2832_v15 = vcombine.low %v252_v14, %v256_v16  ;;  %v315_v14 = vld [vmem:[#allocation4 + $0x690] sm:$0xff] }
 0x10e   :  { %1715 = vmatpush1.bf16.msra.mxu0 %v2814_v8  ;;  %1801 = vmatpush1.bf16.msra.mxu1 %v2816_v9  ;;  %v308_v8 = vld [vmem:[#allocation4 + $0x658] sm:$0xff]  ;;  %v319_v16 = vld [vmem:[#allocation4 + $0x6b0] sm:$0xff] }
 0x10f   :  { %1716 = vmatprep.subr.bf16.mxu0 %v2823_v10  ;;  %1802 = vmatprep.subr.bf16.mxu1 %v2825_v11  ;;  %v312_v9 = vld [vmem:[#allocation4 + $0x678] sm:$0xff]  ;;  %v2878_v10 = vcombine.low %v299_v61, %v303_v62  ;;  %v2880_v11 = vcombine.low %v300_v0, %v304_v1  ;;  %v2895_v23 = vcombine.high %v315_v14, %v319_v16  ;;  %v3184_v54 = vld [vmem:[#allocation7 + $0x28] sm:$0xff]   ;;  %v3190_v61 = vld [vmem:[#allocation7 + $0x78] sm:$0xff]  }
 0x110   :  { %2908 = vmatprep.mubr.msk.bf16.mxu0 %vm1467_vm0, %v3487_v26  ;;  %2909 = vmatprep.mubr.msk.bf16.mxu1 %vm1467_vm0, %v3487_v26  ;;  %v2849_v26 = vcombine.high %v268_v30, %v272_v31  ;;  %v2889_v13 = vcombine.high %v308_v8, %v312_v9  ;;  %v2888_v22 = vcombine.low %v308_v8, %v312_v9  ;;  %v3185_v55 = vld [vmem:[#allocation7 + $0xa8] sm:$0xff]   ;;  %v3191_v62 = vld [vmem:[#allocation7 + $0xf8] sm:$0xff]  }
 0x111   :  { %v3192_v0 = vld [vmem:[#allocation7 + $0x38] sm:$0xff]  }
 0x112   :  { %1717 = vmatpush1.bf16.msra.mxu0 %v2822_v17  ;;  %1803 = vmatpush1.bf16.msra.mxu1 %v2824_v18  ;;  %v323_v17 = vld [vmem:[#allocation4 + $0x6d0] sm:$0xff]  ;;  %v316_v18 = vld [vmem:[#allocation4 + $0x698] sm:$0xff]  ;;  %v3193_v1 = vld [vmem:[#allocation7 + $0xb8] sm:$0xff]  }
 0x113   :  { %1718 = vmatprep.subr.bf16.mxu0 %v2831_v19  ;;  %1804 = vmatprep.subr.bf16.mxu1 %v2833_v20  ;;  %v320_v19 = vld [vmem:[#allocation4 + $0x6b8] sm:$0xff]  ;;  %v2903_v24 = vcombine.high %v323_v17, %v323_v17 }
 0x114   :  { %v324_v20 = vld [vmem:[#allocation4 + $0x6d8] sm:$0xff]  ;;  %v2896_v29 = vcombine.low %v316_v18, %v320_v19 }
 0x115   :  { %v1491_v58 = vand.u32 %v2903_v24, %v3497_v40  ;;  %v2904_v30 = vcombine.low %v324_v20, %v324_v20 }
 0x116   :  { %1719 = vmatpush1.bf16.msra.mxu0 %v2830_v25  ;;  %1805 = vmatpush1.bf16.msra.mxu1 %v2832_v15  ;;  %v2897_v25 = vcombine.high %v316_v18, %v320_v19  ;;  %v2905_v15 = vcombine.high %v324_v20, %v324_v20 }
 0x117   :  { %1720 = vmatprep.subr.bf16.mxu0 %v2839_v27  ;;  %1806 = vmatprep.subr.bf16.mxu1 %v2841_v28  ;;  %v2894_v27 = vcombine.low %v315_v14, %v319_v16  ;;  %v2902_v28 = vcombine.low %v323_v17, %v323_v17 }
 0x118   :  { %v1497_v31 = vand.u32 %v2905_v15, %v3497_v40 }
 0x11a   :  { %1721 = vmatpush1.bf16.msra.mxu0 %v2838_v32  ;;  %1807 = vmatpush1.bf16.msra.mxu1 %v2840_v33  ;;  %v1488_v32 = vand.u32 %v2902_v28, %v3497_v40  ;;  %v1494_v33 = vand.u32 %v2904_v30, %v3497_v40  ;;  %v3169_v40 = vld [vmem:[#allocation7 + $0x88] sm:$0xff]  }
 0x11b   :  { %1722 = vmatprep.subr.bf16.mxu0 %v2847_v34  ;;  %1808 = vmatprep.subr.bf16.mxu1 %v2849_v26  ;;  %v3162_v34 = vld [vmem:[#allocation7 + $0x40] sm:$0xff]  }
 0x11c   :  { %v3163_v26 = vld [vmem:[#allocation7 + $0xc0] sm:$0xff]  }
 0x11e   :  { %1723 = vmatpush1.bf16.msra.mxu0 %v2846_v39  ;;  %1809 = vmatpush1.bf16.msra.mxu1 %v2848_v41  ;;  %v3168_v39 = vld [vmem:[#allocation7 + $0x8] sm:$0xff]   ;;  %v3170_v41 = vld [vmem:[#allocation7 + $0x50] sm:$0xff]  }
 0x11f   :  { %1724 = vmatprep.subr.bf16.mxu0 %v2855_v42  ;;  %1810 = vmatprep.subr.bf16.mxu1 %v2857_v43  ;;  %v3171_v42 = vld [vmem:[#allocation7 + $0xd0] sm:$0xff]  }
 0x120   :  { %v3172_v43 = vld [vmem:[#allocation7 + $0x10] sm:$0xff]  }
 0x122   :  { %1725 = vmatpush1.bf16.msra.mxu0 %v2854_v48  ;;  %1811 = vmatpush1.bf16.msra.mxu1 %v2856_v49  ;;  %v3178_v48 = vld [vmem:[#allocation7 + $0x60] sm:$0xff]  }
 0x123   :  { %1726 = vmatprep.subr.bf16.mxu0 %v2863_v50  ;;  %1812 = vmatprep.subr.bf16.mxu1 %v2865_v51  ;;  %v3179_v49 = vld [vmem:[#allocation7 + $0xe0] sm:$0xff]  }
 0x124   :  { %v3180_v50 = vld [vmem:[#allocation7 + $0x20] sm:$0xff]  }
 0x125   :  { %v3181_v51 = vld [vmem:[#allocation7 + $0xa0] sm:$0xff]  }
 0x126   :  { %1727 = vmatpush1.bf16.msra.mxu0 %v2862_v56  ;;  %1813 = vmatpush1.bf16.msra.mxu1 %v2864_v57  ;;  %v3186_v56 = vld [vmem:[#allocation7 + $0x70] sm:$0xff]  }
 0x127   :  { %1728 = vmatprep.subr.bf16.mxu0 %v2871_v59  ;;  %1814 = vmatprep.subr.bf16.mxu1 %v2873_v60  ;;  %v3187_v57 = vld [vmem:[#allocation7 + $0xf0] sm:$0xff]  }
 0x128   :  { %v3188_v59 = vld [vmem:[#allocation7 + $0x30] sm:$0xff]  }
 0x129   :  { %v3189_v60 = vld [vmem:[#allocation7 + $0xb0] sm:$0xff]  }
 0x12a   :  { %1729 = vmatpush1.bf16.msra.mxu0 %v2870_v2  ;;  %1815 = vmatpush1.bf16.msra.mxu1 %v2872_v3  ;;  %v3194_v2 = vld [vmem:[#allocation7 + $0x140] sm:$0xff]  }
 0x12b   :  { %1730 = vmatprep.subr.bf16.mxu0 %v2879_v4  ;;  %1816 = vmatprep.subr.bf16.mxu1 %v2881_v5  ;;  %v3195_v3 = vld [vmem:[#allocation7 + $0x1c0] sm:$0xff]   ;;  %v327_v4 = vlaneseq }
 0x12d   :  { %v3521_v5 = vshrl.u32 %v327_v4, 7  ;;  %v3221_v4 = vld [vmem:[#allocation7 + $0x1b0] sm:$0xff]  }
 0x12e   :  { %1731 = vmatpush1.bf16.msra.mxu0 %v2878_v10  ;;  %1817 = vmatpush1.bf16.msra.mxu1 %v2880_v11 }
 0x12f   :  { %1732 = vmatprep.subr.bf16.mxu0 %v2887_v12  ;;  %1818 = vmatprep.subr.bf16.mxu1 %v2889_v13  ;;  %v329_v6 = vsub.s32 0, %v3521_v5  ;;  %v337_v8 = vsub.s32 2, %v3521_v5  ;;  %v333_v9 = vsub.s32 1, %v3521_v5  ;;  %v341_v10 = vsub.s32 3, %v3521_v5 }
 0x131   :  { %v330_v11 = vrot.slane %v3524_v7, %v329_v6  ;;  %v338_v12 = vrot.slane %v3524_v7, %v337_v8  ;;  %v334_v13 = vrot.slane %v3524_v7, %v333_v9  ;;  %v342_v14 = vrot.slane %v3524_v7, %v341_v10  ;;  %v3222_v6 = vld [vmem:[#allocation7 + $0x178] sm:$0xff]  }
 0x132   :  { %1733 = vmatpush1.bf16.msra.mxu0 %v2886_v21  ;;  %1819 = vmatpush1.bf16.msra.mxu1 %v2888_v22  ;;  %v3223_v8 = vld [vmem:[#allocation7 + $0x1f8] sm:$0xff]  }
 0x133   :  { %1734 = vmatprep.subr.bf16.mxu0 %v2895_v23  ;;  %1820 = vmatprep.subr.bf16.mxu1 %v2897_v25  ;;  %v3224_v9 = vld [vmem:[#allocation7 + $0x138] sm:$0xff]  }
 0x134   :  { %v3225_v10 = vld [vmem:[#allocation7 + $0x1b8] sm:$0xff]  }
 0x136   :  { %1735 = vmatpush1.bf16.msra.mxu0 %v2894_v27  ;;  %1821 = vmatpush1.bf16.msra.mxu1 %v2896_v29 }
 0x137   :  { %1736 = vmatprep.subr.bf16.mxu0 %v1491_v58  ;;  %1822 = vmatprep.subr.bf16.mxu1 %v1497_v31 }
 0x13a   :  { %1737 = vmatpush1.bf16.msra.mxu0 %v1488_v32  ;;  %1823 = vmatpush1.bf16.msra.mxu1 %v1494_v33 }
 0x13b   :  { %2993 = vmatprep.subr.bf16.mxu0 %v3162_v34  ;;  %3015 = vmatprep.subr.bf16.mxu1 %v3163_v26 }
 0x13d   :  { %1747 = vmatmul.mubr.bf16.vlgmr.msra.gmra.mrb[4].mxu0 %v3503_v63  ;;  %1833 = vmatmul.mubr.bf16.vlgmr.msra.gmra.mrb[4].mxu1 %v3503_v63  ;;  %v3177_v63 = vld [vmem:[#allocation7 + $0x98] sm:$0xff]  }
 0x13e   :  { %2994 = vmatpush3.bf16.msra.mxu0 %v3164_v35  ;;  %3016 = vmatpush3.bf16.msra.mxu1 %v3165_v36 }
 0x13f   :  { %2995 = vmatprep.subr.bf16.mxu0 %v3166_v37  ;;  %3017 = vmatprep.subr.bf16.mxu1 %v3167_v38 }
 0x142   :  { %2996 = vmatpush3.bf16.msra.mxu0 %v3168_v39  ;;  %3018 = vmatpush3.bf16.msra.mxu1 %v3169_v40 }
 0x143   :  { %2997 = vmatprep.subr.bf16.mxu0 %v3170_v41  ;;  %3019 = vmatprep.subr.bf16.mxu1 %v3171_v42  ;;  %v3196_v41 = vld [vmem:[#allocation7 + $0x100] sm:$0xff]  }
 0x146   :  { %2998 = vmatpush3.bf16.msra.mxu0 %v3172_v43  ;;  %3020 = vmatpush3.bf16.msra.mxu1 %v3173_v44  ;;  %v3197_v43 = vld [vmem:[#allocation7 + $0x180] sm:$0xff]   ;;  %v3198_v44 = vld [vmem:[#allocation7 + $0x148] sm:$0xff]  }
 0x147   :  { %2999 = vmatprep.subr.bf16.mxu0 %v3174_v45  ;;  %3021 = vmatprep.subr.bf16.mxu1 %v3175_v46  ;;  %v3199_v45 = vld [vmem:[#allocation7 + $0x1c8] sm:$0xff]  }
 0x148   :  { %v3200_v46 = vld [vmem:[#allocation7 + $0x108] sm:$0xff]  }
 0x14a   :  { %3000 = vmatpush3.bf16.msra.mxu0 %v3176_v47  ;;  %3022 = vmatpush3.bf16.msra.mxu1 %v3177_v63  ;;  %v3201_v47 = vld [vmem:[#allocation7 + $0x188] sm:$0xff]   ;;  %v3202_v63 = vld [vmem:[#allocation7 + $0x150] sm:$0xff]  }
 0x14b   :  { %3001 = vmatprep.subr.bf16.mxu0 %v3178_v48  ;;  %3023 = vmatprep.subr.bf16.mxu1 %v3179_v49  ;;  %v3203_v48 = vld [vmem:[#allocation7 + $0x1d0] sm:$0xff]  }
 0x14c   :  { %v3204_v49 = vld [vmem:[#allocation7 + $0x110] sm:$0xff]  }
 0x14e   :  { %3002 = vmatpush3.bf16.msra.mxu0 %v3180_v50  ;;  %3024 = vmatpush3.bf16.msra.mxu1 %v3181_v51  ;;  %v3205_v50 = vld [vmem:[#allocation7 + $0x190] sm:$0xff]   ;;  %v3206_v51 = vld [vmem:[#allocation7 + $0x158] sm:$0xff]  }
 0x14f   :  { %3003 = vmatprep.subr.bf16.mxu0 %v3182_v52  ;;  %3025 = vmatprep.subr.bf16.mxu1 %v3183_v53  ;;  %v3207_v52 = vld [vmem:[#allocation7 + $0x1d8] sm:$0xff]  }
 0x150   :  { %v3208_v53 = vld [vmem:[#allocation7 + $0x118] sm:$0xff]  }
 0x152   :  { %3004 = vmatpush3.bf16.msra.mxu0 %v3184_v54  ;;  %3026 = vmatpush3.bf16.msra.mxu1 %v3185_v55  ;;  %v3209_v54 = vld [vmem:[#allocation7 + $0x198] sm:$0xff]   ;;  %v3210_v55 = vld [vmem:[#allocation7 + $0x160] sm:$0xff]  }
 0x153   :  { %3005 = vmatprep.subr.bf16.mxu0 %v3186_v56  ;;  %3027 = vmatprep.subr.bf16.mxu1 %v3187_v57  ;;  %v3211_v56 = vld [vmem:[#allocation7 + $0x1e0] sm:$0xff]  }
 0x154   :  { %v3212_v57 = vld [vmem:[#allocation7 + $0x120] sm:$0xff]  }
 0x156   :  { %3006 = vmatpush3.bf16.msra.mxu0 %v3188_v59  ;;  %3028 = vmatpush3.bf16.msra.mxu1 %v3189_v60  ;;  %v3213_v59 = vld [vmem:[#allocation7 + $0x1a0] sm:$0xff]   ;;  %v3214_v60 = vld [vmem:[#allocation7 + $0x168] sm:$0xff]  }
 0x157   :  { %3007 = vmatprep.subr.bf16.mxu0 %v3190_v61  ;;  %3029 = vmatprep.subr.bf16.mxu1 %v3191_v62  ;;  %v3215_v61 = vld [vmem:[#allocation7 + $0x1e8] sm:$0xff]  }
 0x158   :  { %v3216_v62 = vld [vmem:[#allocation7 + $0x128] sm:$0xff]  }
 0x15a   :  { %3008 = vmatpush3.bf16.msra.mxu0 %v3192_v0  ;;  %3030 = vmatpush3.bf16.msra.mxu1 %v3193_v1  ;;  %v3217_v0 = vld [vmem:[#allocation7 + $0x1a8] sm:$0xff]   ;;  %v3218_v1 = vld [vmem:[#allocation7 + $0x170] sm:$0xff]  }
 0x15b   :  { %3037 = vmatprep.subr.bf16.mxu0 %v3194_v2  ;;  %3059 = vmatprep.subr.bf16.mxu1 %v3195_v3  ;;  %v3219_v2 = vld [vmem:[#allocation7 + $0x1f0] sm:$0xff]  }
 0x15c   :  { %v3220_v3 = vld [vmem:[#allocation7 + $0x130] sm:$0xff]  }
 0x1a0   :  { %v1576_v16 = vpop.f32.mrb[0].mxu0  ;;  %v1662_v18 = vpop.f32.mrb[0].mxu1 }
 0x1a1   :  { %v3110_v17 = vadd.f32 %v1576_v16, %v330_v11  ;;  %v1578_v19 = vpop.f32.mrb[1].mxu0  ;;  %v3114_v20 = vadd.f32 %v1662_v18, %v338_v12  ;;  %v1664_v22 = vpop.f32.mrb[1].mxu1  ;;  %v357_v16 = vsub.s32 7, %v3521_v5 }
 0x1a2   :  { %v3111_v21 = vadd.f32 %v1578_v19, %v334_v13  ;;  %v1580_v23 = vpop.f32.mrb[2].mxu0  ;;  %v3115_v24 = vadd.f32 %v1664_v22, %v342_v14  ;;  %v1666_v15 = vpop.f32.mrb[2].mxu1 }
 0x1a3   :  { %v3112_v25 = vadd.f32 %v1580_v23, %v330_v11  ;;  %v1582_v27 = vpop.f32.mrb[3].mxu0  ;;  %v3116_v28 = vadd.f32 %v1666_v15, %v338_v12  ;;  %v1668_v58 = vpop.f32.mrb[3].mxu1  ;;  %v1843_v30 = vmax.f32 %v3110_v17, 0.0  ;;  %v1845_v33 = vmax.f32 %v3114_v20, 0.0 }
 0x1a4   :  { %v3113_v29 = vadd.f32 %v1582_v27, %v334_v13  ;;  %v3117_v32 = vadd.f32 %v1668_v58, %v342_v14  ;;  %v1844_v34 = vmax.f32 %v3111_v21, 0.0  ;;  %v1846_v36 = vmax.f32 %v3115_v24, 0.0 }
 0x1a5   :  { %v1851_v31 = vmax.f32 %v3112_v25, 0.0  ;;  %v1853_v26 = vmax.f32 %v3116_v28, 0.0  ;;  %v3360_v11 = vmov 0.0   ;;  %v345_v12 = vsub.s32 4, %v3521_v5 }
 0x1a6   :  { %v1852_v35 = vmax.f32 %v3113_v29, 0.0  ;;  %v1854_v38 = vmax.f32 %v3117_v32, 0.0  ;;  %v353_v13 = vsub.s32 6, %v3521_v5  ;;  %v349_v14 = vsub.s32 5, %v3521_v5 }
 0x1a7   :  { %v1859_v37 = vpack.c.bf16 %v1851_v31, %v1843_v30  ;;  %v1861_v39 = vpack.c.bf16 %v1853_v26, %v1845_v33  ;;  %v346_v17 = vrot.slane %v3524_v7, %v345_v12  ;;  %v358_v20 = vrot.slane %v3524_v7, %v357_v16 }
 0x1a8   :  { %v1860_v40 = vpack.c.bf16 %v1852_v35, %v1844_v34  ;;  %v1862_v42 = vpack.c.bf16 %v1854_v38, %v1846_v36  ;;  %v354_v18 = vrot.slane %v3524_v7, %v353_v13  ;;  %v350_v19 = vrot.slane %v3524_v7, %v349_v14 }
 0x1aa   :  { %2418 = vmatprep.mubr.bf16.mxu0 %v1860_v40  ;;  %2459 = vmatprep.mubr.bf16.mxu1 %v1862_v42 }
 0x1ab   :  { %2419 = vmatmul.mubr.bf16.vlgmr.msra.gmra.mrb[8].mxu0 %v1859_v37  ;;  %2460 = vmatmul.mubr.bf16.vlgmr.msra.gmra.mrb[8].mxu1 %v1861_v39 }
 0x1ac   :  { %3038 = vmatpush3.bf16.msra.mxu0 %v3196_v41  ;;  %3060 = vmatpush3.bf16.msra.mxu1 %v3197_v43 }
 0x1ad   :  { %3039 = vmatprep.subr.bf16.mxu0 %v3198_v44  ;;  %3061 = vmatprep.subr.bf16.mxu1 %v3199_v45  ;;  %v3226_v44 = vld [vmem:[#allocation9] sm:$0xff]  }
 0x1b0   :  { %3040 = vmatpush3.bf16.msra.mxu0 %v3200_v46  ;;  %3062 = vmatpush3.bf16.msra.mxu1 %v3201_v47  ;;  %v3227_v46 = vld [vmem:[#allocation9 + $0x8] sm:$0xff]   ;;  %v3228_v47 = vld [vmem:[#allocation9 + $0x10] sm:$0xff]  }
 0x1b1   :  { %3041 = vmatprep.subr.bf16.mxu0 %v3202_v63  ;;  %3063 = vmatprep.subr.bf16.mxu1 %v3203_v48  ;;  %v3229_v63 = vld [vmem:[#allocation9 + $0x18] sm:$0xff]   ;;  %v3230_v48 = vld [vmem:[#allocation9 + $0x20] sm:$0xff]  }
 0x1b4   :  { %3042 = vmatpush3.bf16.msra.mxu0 %v3204_v49  ;;  %3064 = vmatpush3.bf16.msra.mxu1 %v3205_v50  ;;  %v3231_v49 = vld [vmem:[#allocation9 + $0x28] sm:$0xff]   ;;  %v3232_v50 = vld [vmem:[#allocation9 + $0x30] sm:$0xff]  }
 0x1b5   :  { %3043 = vmatprep.subr.bf16.mxu0 %v3206_v51  ;;  %3065 = vmatprep.subr.bf16.mxu1 %v3207_v52  ;;  %v3233_v51 = vld [vmem:[#allocation9 + $0x38] sm:$0xff]  }
 0x1b8   :  { %3044 = vmatpush3.bf16.msra.mxu0 %v3208_v53  ;;  %3066 = vmatpush3.bf16.msra.mxu1 %v3209_v54  ;;  %v2910_v54 = vld [vmem:[%s3563_s4] ss:$0 sm:$0xff] }
 0x1b9   :  { %3045 = vmatprep.subr.bf16.mxu0 %v3210_v55  ;;  %3067 = vmatprep.subr.bf16.mxu1 %v3211_v56 }
 0x1bc   :  { %3046 = vmatpush3.bf16.msra.mxu0 %v3212_v57  ;;  %3068 = vmatpush3.bf16.msra.mxu1 %v3213_v59 }
 0x1bd   :  { %3047 = vmatprep.subr.bf16.mxu0 %v3214_v60  ;;  %3069 = vmatprep.subr.bf16.mxu1 %v3215_v61 }
 0x1c0   :  { %3048 = vmatpush3.bf16.msra.mxu0 %v3216_v62  ;;  %3070 = vmatpush3.bf16.msra.mxu1 %v3217_v0 }
 0x1c1   :  { %3049 = vmatprep.subr.bf16.mxu0 %v3218_v1  ;;  %3071 = vmatprep.subr.bf16.mxu1 %v3219_v2 }
 0x1c4   :  { %3050 = vmatpush3.bf16.msra.mxu0 %v3220_v3  ;;  %3072 = vmatpush3.bf16.msra.mxu1 %v3221_v4 }
 0x1c5   :  { %3051 = vmatprep.subr.bf16.mxu0 %v3222_v6  ;;  %3073 = vmatprep.subr.bf16.mxu1 %v3223_v8 }
 0x1c8   :  { %3052 = vmatpush3.bf16.msra.mxu0 %v3224_v9  ;;  %3074 = vmatpush3.bf16.msra.mxu1 %v3225_v10 }
 0x1c9   :  { %3090 = vmatprep.subr.bf16.mxu0 %v3360_v11 }
 0x210   :  { %v1748_v21 = vpop.f32.mrb[4].mxu0  ;;  %v1834_v23 = vpop.f32.mrb[4].mxu1 }
 0x211   :  { %v3118_v22 = vadd.f32 %v1748_v21, %v346_v17  ;;  %v1750_v24 = vpop.f32.mrb[5].mxu0  ;;  %v3122_v25 = vadd.f32 %v1834_v23, %v354_v18  ;;  %v1836_v27 = vpop.f32.mrb[5].mxu1 }
 0x212   :  { %v3119_v15 = vadd.f32 %v1750_v24, %v350_v19  ;;  %v1752_v28 = vpop.f32.mrb[6].mxu0  ;;  %v3123_v29 = vadd.f32 %v1836_v27, %v358_v20  ;;  %v1838_v30 = vpop.f32.mrb[6].mxu1 }
 0x213   :  { %v3120_v58 = vadd.f32 %v1752_v28, %v346_v17  ;;  %v1754_v5 = vpop.f32.mrb[7].mxu0  ;;  %v3124_v31 = vadd.f32 %v1838_v30, %v354_v18  ;;  %v1840_v33 = vpop.f32.mrb[7].mxu1  ;;  %v1847_v34 = vmax.f32 %v3118_v22, 0.0  ;;  %v1849_v36 = vmax.f32 %v3122_v25, 0.0 }
 0x214   :  { %v3121_v32 = vadd.f32 %v1754_v5, %v350_v19  ;;  %v3125_v35 = vadd.f32 %v1840_v33, %v358_v20  ;;  %v1848_v7 = vmax.f32 %v3119_v15, 0.0  ;;  %v1850_v39 = vmax.f32 %v3123_v29, 0.0  ;;  %v2975_v29 = vld [vmem:[%s3565_s6] ss:$0 sm:$0xff] }
 0x215   :  { %v1855_v26 = vmax.f32 %v3120_v58, 0.0  ;;  %v1857_v37 = vmax.f32 %v3124_v31, 0.0 }
 0x216   :  { %v1856_v38 = vmax.f32 %v3121_v32, 0.0  ;;  %v1858_v41 = vmax.f32 %v3125_v35, 0.0 }
 0x217   :  { %v1863_v40 = vpack.c.bf16 %v1855_v26, %v1847_v34  ;;  %v1865_v42 = vpack.c.bf16 %v1857_v37, %v1849_v36 }
 0x218   :  { %v1864_v43 = vpack.c.bf16 %v1856_v38, %v1848_v7  ;;  %v1866_v45 = vpack.c.bf16 %v1858_v41, %v1850_v39 }
 0x21a   :  { %2500 = vmatprep.mubr.bf16.mxu0 %v1864_v43  ;;  %2541 = vmatprep.mubr.bf16.mxu1 %v1866_v45 }
 0x21b   :  { %2501 = vmatmul.mubr.bf16.vlgmr.msra.gmra.mrb[12].mxu0 %v1863_v40  ;;  %2542 = vmatmul.mubr.bf16.vlgmr.msra.gmra.mrb[12].mxu1 %v1865_v42 }
 0x21c   :  { %3091 = vmatpush3.bf16.msra.mxu0 %v3226_v44  ;;  %3106 = vmatprep.mubr.msk.bf16.mxu0 %vm3361_vm3, %v3360_v11 }
 0x21d   :  { %3092 = vmatprep.subr.bf16.mxu0 %v3360_v11 }
 0x220   :  { %3093 = vmatpush3.bf16.msra.mxu0 %v3227_v46 }
 0x221   :  { %3094 = vmatprep.subr.bf16.mxu0 %v3360_v11 }
 0x224   :  { %3095 = vmatpush3.bf16.msra.mxu0 %v3228_v47 }
 0x225   :  { %3096 = vmatprep.subr.bf16.mxu0 %v3360_v11 }
 0x228   :  { %3097 = vmatpush3.bf16.msra.mxu0 %v3229_v63 }
 0x229   :  { %3098 = vmatprep.subr.bf16.mxu0 %v3360_v11 }
 0x22c   :  { %3099 = vmatpush3.bf16.msra.mxu0 %v3230_v48 }
 0x22d   :  { %3100 = vmatprep.subr.bf16.mxu0 %v3360_v11 }
 0x230   :  { %3101 = vmatpush3.bf16.msra.mxu0 %v3231_v49 }
 0x231   :  { %3102 = vmatprep.subr.bf16.mxu0 %v3360_v11 }
 0x234   :  { %3103 = vmatpush3.bf16.msra.mxu0 %v3232_v50 }
 0x235   :  { %3104 = vmatprep.subr.bf16.mxu0 %v3360_v11 }
 0x238   :  { %3105 = vmatpush3.bf16.msra.mxu0 %v3233_v51 }
 0x27e   :  { %v3009_v52 = vpop.f32.mrb[8].mxu0  ;;  %v3031_v53 = vpop.f32.mrb[8].mxu1 }
 0x27f   :  { %v3010_v55 = vpop.f32.mrb[9].mxu0  ;;  %v3032_v57 = vpop.f32.mrb[9].mxu1 }
 0x280   :  { %v3011_v56 = vadd.f32 %v3010_v55, %v3009_v52  ;;  %v3012_v59 = vpop.f32.mrb[10].mxu0  ;;  %v3033_v60 = vadd.f32 %v3032_v57, %v3031_v53  ;;  %v3034_v61 = vpop.f32.mrb[10].mxu1 }
 0x281   :  { %v3013_v62 = vpop.f32.mrb[11].mxu0  ;;  %v3035_v2 = vpop.f32.mrb[11].mxu1 }
 0x282   :  { %v2421_v0 = vadd.f32 %v3011_v56, %v2910_v54  ;;  %v3014_v1 = vadd.f32 %v3013_v62, %v3012_v59  ;;  %v3036_v3 = vadd.f32 %v3035_v2, %v3034_v61 }
 0x284   :  { %v2462_v4 = vadd.f32 %v3033_v60, %v2421_v0  ;;  %v2424_v6 = vadd.f32 %v3014_v1, %v2910_v54 }
 0x286   :  { %v2465_v8 = vadd.f32 %v3036_v3, %v2424_v6 }
 0x2ee   :  { %v3053_v9 = vpop.f32.mrb[12].mxu0  ;;  %v3075_v10 = vpop.f32.mrb[12].mxu1 }
 0x2ef   :  { %v3054_v11 = vpop.f32.mrb[13].mxu0  ;;  %v3076_v13 = vpop.f32.mrb[13].mxu1 }
 0x2f0   :  { %v3055_v12 = vadd.f32 %v3054_v11, %v3053_v9  ;;  %v3056_v14 = vpop.f32.mrb[14].mxu0  ;;  %v3077_v16 = vadd.f32 %v3076_v13, %v3075_v10  ;;  %v3078_v17 = vpop.f32.mrb[14].mxu1 }
 0x2f1   :  { %v3057_v18 = vpop.f32.mrb[15].mxu0  ;;  %v3079_v21 = vpop.f32.mrb[15].mxu1 }
 0x2f2   :  { %v2503_v19 = vadd.f32 %v3055_v12, %v2462_v4  ;;  %v3058_v20 = vadd.f32 %v3057_v18, %v3056_v14  ;;  %v3080_v22 = vadd.f32 %v3079_v21, %v3078_v17 }
 0x2f4   :  { %v2544_v23 = vadd.f32 %v3077_v16, %v2503_v19  ;;  %v2506_v24 = vadd.f32 %v3058_v20, %v2465_v8 }
 0x2f6   :  { %v2547_v25 = vadd.f32 %v3080_v22, %v2506_v24  ;;  %v2550_v15 = vmax.f32 %v2544_v23, 0.0 }
 0x2f8   :  { %v2551_v27 = vmax.f32 %v2547_v25, 0.0 }
 0x2fa   :  { %v2552_v28 = vpack.c.bf16 %v2551_v27, %v2550_v15 }
 0x2fc   :  { %3107 = vmatmul.mubr.bf16.vlgmr.msra.gmra.mrb[16].mxu0 %v2552_v28 }
 0x3cf   :  { %v2658_v58 = vpop.f32.mrb[16].mxu0 }
 0x3d0   :  { %v3108_v30 = vpop.f32.mrb[17].mxu0  ;;  %v2659_v31 = vadd.f32 %v2975_v29, %v2658_v58 }
 0x3d1   :  { %v2661_v5 = vpop.f32.mrb[18].mxu0 }
 0x3d2   :  { %v2662_v32 = vadd.f32 %v2975_v29, %v2661_v5  ;;  %v3109_v33 = vpop.f32.mrb[19].mxu0 }
 0x3d4   :  { %v2991_v34 = vpack.c.bf16 %v2662_v32, %v2659_v31 }
 0x3d6   :  { %2992 = vst [vmem:[%s3566_s7] sm:$0xff] %v2991_v34  }
 0x3d7   :  { %2679 = vsyncpa [#allocation3], 1 }
 0x3d8   :  { %2680 = vsyncpa [#allocation5], 1 }
 0x3d9   :  { %2681 = vsyncpa [#allocation8], 1 }

</bundles_post_ra>
